<compile_context>
chip_gen: v7x
topology: tpu7x:2x2x1
jax: 0.10.0
libtpu: 0.0.40
codegen_flags: <defaults>
</compile_context>

<pallas_src>
import jax
import jax.numpy as jnp
from jax.experimental import pallas as pl
from jax.experimental.pallas import tpu as pltpu


def _round_up(x, m):
    return (x + m - 1) // m * m


def critic_kernel(x_ref, w1_ref, w2_ref, o_ref):
    # First projection on the MXU: bf16 operands, f32 accumulate.
    # W1 arrives pre-transposed to (in, out) bf16 at parameter-init time, so this
    # is the canonical (tb,K)@(K,N) contraction -- no per-step RHS transpose.
    x_bf = x_ref[...].astype(jnp.bfloat16)     # no-op if producer already emits bf16
    w1_bf = w1_ref[...].astype(jnp.bfloat16)   # no-op: stored bf16 at init
    h = jnp.dot(x_bf, w1_bf, preferred_element_type=jnp.float32)   # (tb, H) f32

    # LeakyReLU (negative_slope=0.01): maximum(h, 0.01*h) == where(h>0, h, 0.01*h)
    # for slopes in (0,1); 2 VPU ops instead of 3.
    h = jnp.maximum(h, 0.01 * h)

    # Second projection (H -> 1): an N=1 MXU matmul wastes the array, so do a VPU
    # multiply + cross-lane (XLU) reduce; the result is written as a lane-dense
    # (1, tb) row so the store and HBM writeback are unmasked / dense.
    w2_row = w2_ref[...].astype(jnp.float32)                 # (1, H)
    row = jnp.sum(h * w2_row, axis=-1)                       # (tb,) f32
    o_ref[...] = row.reshape(1, -1).astype(o_ref.dtype)      # (1, tb)


def critic_forward(x, w1t, w2, *, block_b=2048):
    """x: (B, H); w1t: (H, H) = linear1.weight.T (in, out), stored bf16 at init;
    w2: (1, H) = linear2.weight. Returns (B, 1) in x.dtype."""
    B, H = x.shape
    assert w1t.shape == (H, H) and w2.shape == (1, H)
    xb = jnp.dtype(x.dtype).itemsize
    w1b = jnp.dtype(w1t.dtype).itemsize
    w2b = jnp.dtype(w2.dtype).itemsize

    # Per-generation VMEM capacity (per TensorCore): 128 MiB v5e/v6e, 64 MiB v7x.
    try:
        vmem_cap = int(pltpu.get_tpu_info().vmem_capacity_bytes)
    except Exception:
        vmem_cap = 64 << 20            # conservative (v7x) fallback
    budget = int(0.80 * vmem_cap)

    # Resident weights (Pallas double-buffers even constant-index blocks) plus the
    # in-kernel bf16 working copy when W1 arrives as f32.
    w_resident = 2 * H * H * w1b + 2 * H * w2b
    if w1b == 4:
        w_resident += H * H * 2

    def vmem_need(tb):
        need = w_resident
        need += 2 * tb * H * xb        # double-buffered x tile
        need += 2 * tb * 4             # double-buffered (1, tb) out tile
        need += tb * H * 4             # f32 h accumulator
        need += tb * H * 4             # h * w2 product before the reduce
        if xb == 4:
            need += tb * H * 2         # in-kernel bf16 copy of the x tile
        return need + (2 << 20)        # headroom

    # TODO(synk): add a K-tiled fallback (reduction grid axis over H, f32 scratch
    # accumulator, pl.when init/finalize) for H large enough that the resident W1
    # no longer fits VMEM -- matters first on v7x's 64 MiB per-core VMEM.
    assert vmem_need(128) <= budget, "H too large for the resident-W1 strategy"

    # Batch tile: as large as the VMEM budget allows (amortizes per-step overhead),
    # but at most half the padded batch so a v7x megacore keeps both cores busy.
    b128 = _round_up(B, 128)
    tb = min(max(128, _round_up(block_b, 128)), b128)
    if b128 >= 256:
        tb = min(tb, max(128, (b128 // 2) // 128 * 128))
    while tb > 128 and vmem_need(tb) > budget:
        tb -= 128

    b_pad = _round_up(B, tb)
    if b_pad != B:
        x = jnp.pad(x, ((0, b_pad - B), (0, 0)))
    grid = (b_pad // tb,)

    cost = pl.CostEstimate(
        flops=2 * b_pad * H * H + 4 * b_pad * H,
        transcendentals=0,
        bytes_accessed=int(H * H * w1b + H * w2b + b_pad * H * xb + b_pad * 4))

    vmem_limit = min(int(vmem_need(tb)) + (4 << 20), int(0.85 * vmem_cap))

    out = pl.pallas_call(
        critic_kernel,
        out_shape=jax.ShapeDtypeStruct((1, b_pad), x.dtype),
        grid=grid,
        in_specs=[
            pl.BlockSpec((tb, H), lambda i: (i, 0)),   # x tile, pipelined over batch
            pl.BlockSpec((H, H), lambda i: (0, 0)),    # W1 (in,out) resident in VMEM
            pl.BlockSpec((1, H), lambda i: (0, 0)),    # W2 row resident in VMEM
        ],
        out_specs=pl.BlockSpec((1, tb), lambda i: (0, i)),   # lane-dense output row
        compiler_params=pltpu.CompilerParams(
            dimension_semantics=("parallel",),
            vmem_limit_bytes=vmem_limit),
        cost_estimate=cost,
    )(x, w1t, w2)
    return out.reshape(-1)[:B].reshape(B, 1)


if __name__ == "__main__":
    # Small shapes consistent with the module: batch=512, hidden=128
    # (two grid steps with the half-batch cap -> exercises the pipelined /
    #  megacore-parallel path).
    B, H = 512, 128
    key = jax.random.PRNGKey(0)
    kx, k1, k2 = jax.random.split(key, 3)

    bound = 1.0 / jnp.sqrt(H)
    x = jax.random.normal(kx, (B, H), dtype=jnp.float32)
    w1 = jax.random.uniform(k1, (H, H), minval=-bound, maxval=bound, dtype=jnp.float32)
    w2 = jax.random.uniform(k2, (1, H), minval=-bound, maxval=bound, dtype=jnp.float32)

    # One-time parameter-init transform: W1 stored pre-transposed ((in, out)) in
    # bf16 (halves weight DMA bytes and removes the in-kernel RHS transpose).
    w1t_bf16 = jnp.asarray(w1.T, dtype=jnp.bfloat16)

    fwd = jax.jit(critic_forward)
    out = jax.block_until_ready(fwd(x, w1t_bf16, w2))

    # Pure-JAX f32 reference of the PyTorch forward (tolerance relaxed for bf16 W1).
    h_ref = x @ w1.T
    h_ref = jnp.where(h_ref > 0, h_ref, 0.01 * h_ref)
    ref = h_ref @ w2.T

    assert out.shape == (B, 1)
    err = float(jnp.max(jnp.abs(out - ref)))
    assert jnp.allclose(out, ref, atol=3e-2, rtol=3e-2), err
    print("KERNEL_OK")
</pallas_src>

<mosaic_0001>
module attributes {stable_mosaic.version = 11 : i64} {
  func.func @critic_kernel(%arg0: i32, %arg1: memref<256x128xf32, #tpu.memory_space<vmem>>, %arg2: memref<128x128xbf16, #tpu.memory_space<vmem>>, %arg3: memref<1x128xf32, #tpu.memory_space<vmem>>, %arg4: memref<1x256xf32, #tpu.memory_space<vmem>>) attributes {dimension_semantics = [#tpu.dimension_semantics<parallel>], iteration_bounds = array<i64: 2>, scalar_prefetch = 0 : i64, scratch_operands = 0 : i64, tpu.core_type = #tpu.core_type<tc>, window_params = [{transform_indices = @transform_0, window_bounds = array<i64: 256, 128>}, {pipeline_mode = #tpu.pipeline_mode<synchronous>, transform_indices = @transform_1, window_bounds = array<i64: 128, 128>}, {pipeline_mode = #tpu.pipeline_mode<synchronous>, transform_indices = @transform_2, window_bounds = array<i64: 1, 128>}, {transform_indices = @transform_3, window_bounds = array<i64: 1, 256>}]} {
    %c0 = arith.constant 0 : index
    %c0_0 = arith.constant 0 : index
    %0 = vector.load %arg1[%c0, %c0_0] : memref<256x128xf32, #tpu.memory_space<vmem>>, vector<256x128xf32>
    %1 = arith.truncf %0 : vector<256x128xf32> to vector<256x128xbf16>
    %c0_1 = arith.constant 0 : index
    %c0_2 = arith.constant 0 : index
    %2 = vector.load %arg2[%c0_1, %c0_2] : memref<128x128xbf16, #tpu.memory_space<vmem>>, vector<128x128xbf16>
    %cst = arith.constant dense<0.000000e+00> : vector<256x128xf32>
    %3 = tpu.matmul %1, %2, %cst {dimension_numbers = #tpu.dot_dimension_numbers<[1], [0], [0], [1], [0, 0, 1, 1], [], []>} : vector<256x128xbf16>, vector<128x128xbf16>, vector<256x128xf32> -> vector<256x128xf32>
    %cst_3 = arith.constant 0.00999999977 : f32
    %4 = vector.broadcast %cst_3 : f32 to vector<256x128xf32>
    %5 = arith.mulf %4, %3 : vector<256x128xf32>
    %6 = arith.maximumf %3, %5 : vector<256x128xf32>
    %c0_4 = arith.constant 0 : index
    %c0_5 = arith.constant 0 : index
    %7 = vector.load %arg3[%c0_4, %c0_5] : memref<1x128xf32, #tpu.memory_space<vmem>>, vector<1x128xf32>
    %8 = vector.broadcast %7 : vector<1x128xf32> to vector<256x128xf32>
    %9 = arith.mulf %6, %8 : vector<256x128xf32>
    %cst_6 = arith.constant dense<0.000000e+00> : vector<256xf32>
    %10 = vector.multi_reduction <add>, %9, %cst_6 [1] : vector<256x128xf32> to vector<256xf32>
    %11 = vector.shape_cast %10 : vector<256xf32> to vector<1x256xf32>
    %c0_7 = arith.constant 0 : index
    %c0_8 = arith.constant 0 : index
    %12 = vector.load %arg4[%c0_7, %c0_8] : memref<1x256xf32, #tpu.memory_space<vmem>>, vector<1x256xf32>
    tpu.vector_store %arg4[%c0_7, %c0_8], %11 {strides = array<i32>} : memref<1x256xf32, #tpu.memory_space<vmem>>, vector<1x256xf32>,
    return
  }
  func.func @transform_0(%arg0: i32) -> (i32, i32) {
    %c0_i32 = arith.constant 0 : i32
    %c0_i32_0 = arith.constant 0 : i32
    return %arg0, %c0_i32 : i32, i32
  }
  func.func @transform_1(%arg0: i32) -> (i32, i32) {
    %c0_i32 = arith.constant 0 : i32
    %c0_i32_0 = arith.constant 0 : i32
    %c0_i32_1 = arith.constant 0 : i32
    return %c0_i32, %c0_i32_0 : i32, i32
  }
  func.func @transform_2(%arg0: i32) -> (i32, i32) {
    %c0_i32 = arith.constant 0 : i32
    %c0_i32_0 = arith.constant 0 : i32
    %c0_i32_1 = arith.constant 0 : i32
    return %c0_i32, %c0_i32_0 : i32, i32
  }
  func.func @transform_3(%arg0: i32) -> (i32, i32) {
    %c0_i32 = arith.constant 0 : i32
    %c0_i32_0 = arith.constant 0 : i32
    return %c0_i32, %arg0 : i32, i32
  }
}

</mosaic_0001>

<bundles_post_ra>
// kernel: critic_forward.1
= control target key start
LH: loop header
LB: loop body
LE: loop exit
PB: predicated region body
PF: predicated region fallthrough
CT: control target
= control target key end

     0   :  { %8 = vsyncpa [#allocation3], 0  ;;  %s5059_s0 = inlined_call_operand.hbm [shape: f32[512,128], index: 0, kind: input, shape index: {}]   ;;  %s5060_s1 = inlined_call_operand.hbm [shape: bf16[128,128], index: 1, kind: input, shape index: {}]   ;;  %s5061_s2 = inlined_call_operand.vmem [shape: f32[1,128], index: 2, kind: input, shape index: {}]   ;;  %s5062_s3 = inlined_call_operand.hbm [shape: f32[1,512], index: 3, kind: output, shape index: {}]  }
   0x1   :  { %10 = vsyncpa [#allocation3 + $0x1], 0 }
   0x2   :  { %11 = vsyncpa [#allocation6], 0 }
   0x3   :  { %12 = vsyncpa [#allocation4], 0 }
   0x4   :  { %14 = vsyncpa [#allocation4 + $0x1], 0  ;;  %s4020_s12 = smov 0   ;;  %s4022_s13 = smov 0  }
   0x5   :  { %s4024_s14 = smov 0   ;;  %s4026_s15 = smov 0  }
   0x6 LB: > { %s4041_s16 = sadd.s32 4294967295, %s3989_s15   ;;  %s3673_s17 = sadd.s32 4294967294, %s3989_s15   ;;  %s3989_s15 = sphi %s4026_s15, %s5082_s15   ;;  %s3985_s14 = sphi %s4024_s14, %s5081_s14   ;;  %s3981_s13 = sphi %s4022_s13, %s5080_s13   ;;  %s3977_s12 = sphi %s4020_s12, %s5079_s12  }
   0x7   : > { %p40_p0 = scmp.ne.s32.totalorder %s3981_s13, %s3977_s12  ;;  %p5063_p1 = scmp.eq.s32.totalorder %s4041_s16, 0 }
   0x8   : > { %p112_p3 = scmp.eq.s32.totalorder %s3673_s17, 1  ;;  %p3674_p5 = scmp.ge.s32.totalorder %s3989_s15, 1 }
   0x9   : > { %p4050_p4 = por %p5063_p1, %p40_p0  ;;  %p119_p7 = scmp.lt.s32.totalorder %s3989_s15, 3 }
   0xa   : > { %p4055_p6 = por %p112_p3, %p40_p0  ;;  %s3991_s21 = smov [#allocation5]  }
   0xb   : > { %s5066_s18 = scalar_select %p4050_p4, 1, 0 }
   0xc   : > { %s5067_s19 = scalar_select %p4055_p6, 1, 0 }
   0xd   : > { %p4060_p8 = pnand %p3674_p5, %p119_p7  ;;  %s131_s22 = sshll.u32 %s3991_s21, 4  ;;  %s4064_s22 = int_to_ptr.vmem [resolvable:$true] %s131_s22 }
   0xe   : > { %s4076_s24 = sadd.s32 1, %s3989_s15   ;;  %s27_s25 = sadd.s32 1, %s3985_s14 }
   0xf   : > { %s5068_s20 = scalar_select %p4060_p8, 1, 0 }
  0x10   : > { %p3796_p9 = pneg %p4060_p8  ;;  %s24_s26 = ssub.s32 %s3989_s15, %s4076_s24 }
  0x11   : > { %s3861_s29 = scalar_lea.hbm %s5060_s1, 1024 }
  0x12   : > { %p4071_p11 = pnand %p3796_p9, %p5063_p1  ;;  %p3862_p12 = scmp.ne.s32.totalorder %s5060_s1, %s3861_s29 }
  0x13   : > { %p3868_p5 = scmp.lt.u32.totalorder %s3861_s29, %s5060_s1 }
  0x14   : > { %p3863_p13 = pneg %p4071_p11 }
  0x16   : > { %p3864_p0 = pnand %p3863_p13, %p3862_p12 }
  0x18   : > { %p3865_p3 = pneg %p3864_p0 }
  0x1a   : > { %p3870_p7 = pnand %p3868_p5, %p3865_p3 }
  0x1c   : > { %3873 = shalt.err (!%p3870_p7)
}
  0x1d   : > { %s3874_s7 = scalar_lea.vmem %s4064_s22, 1024  ;;  %p3882_p2 = scmp.lt.s32.totalorder %s4064_s22, %s4064_s22 }
  0x1e   : > { %p3875_p9 = scmp.ne.s32.totalorder %s4064_s22, %s3874_s7  ;;  %p3883_p6 = scmp.lt.s32.totalorder %s3874_s7, %s3874_s7 }
  0x20   : > { %p3877_p10 = pnand %p3875_p9, %p3863_p13  ;;  %p3884_p4 = por %p3883_p6, %p3882_p2 }
  0x22   : > { %p3878_p1 = pneg %p3877_p10 }
  0x24   : > { %p3885_p8 = pnand %p3884_p4, %p3878_p1 }
  0x26   : > { %3888 = shalt.err (!%p3885_p8)
}
  0x27   : > { %s3992_s8 = smov 64   ;;  %s3993_s9 = smov 4  }
  0x28   : > { %3799 = dma.hbm_to_vmem [thread:$0]  (!%p4071_p11), %s5060_s1, 1024, %s4064_s22, [#allocation6], %s3992_s8, %s3992_s8, %s3993_s9  }
  0x29   : > { %p25_p2 = scmp.eq.s32.totalorder %s24_s26, 0  ;;  %p34_p1 = scmp.ne.s32.totalorder %s3985_s14, %s3981_s13 }
  0x2a   : > { %p35_p4 = scmp.eq.s32.totalorder %s3989_s15, 0  ;;  %p3809_p6 = scmp.lt.s32.totalorder %s3989_s15, 2 }
  0x2b   : > { %s4107_s17 = scalar_select %p25_p2, %s3985_s14, %s27_s25  }
  0x2c   : > { %p36_p8 = por %p35_p4, %p34_p1  ;;  %p5070_p10 = scmp.eq.s32.totalorder %s4041_s16, 1 }
  0x2d   : > { %s148_s27 = sand.u32 1, %s3985_s14   ;;  %s3698_s28 = sshll.u32 %s3989_s15, 12 }
  0x2e   : > { %p4111_p12 = por %p5070_p10, %p34_p1  ;;  %s3677_s29 = sshll.u32 %s148_s27, 8 }
  0x2f   : > { %s4120_s4 = scalar_lea.hbm %s5059_s0, %s3698_s28  ;;  %s152_s22 = scalar_lea.vmem [#allocation2], %s3677_s29 }
  0x30   : > { %s159_s25 = sshll.u32 %s152_s22, 4  ;;  %p4122_p11 = pnand %p3809_p6, %p36_p8  ;;  %s4126_s25 = int_to_ptr.vmem [resolvable:$true] %s159_s25 }
  0x31   : > { %s4128_s5 = scalar_lea.sflag [#allocation3], %s148_s27  ;;  %s3889_s6 = scalar_lea.hbm %s4120_s4, 4096 }
  0x32   : > { %p3890_p13 = scmp.ne.s32.totalorder %s4120_s4, %s3889_s6  ;;  %p3891_p0 = pneg %p4122_p11 }
  0x33   : > { %s3894_s9 = scalar_lea.hbm %s5059_s0, 8192  ;;  %p3895_p7 = scmp.lt.u32.totalorder %s4120_s4, %s5059_s0 }
  0x34   : > { %p3892_p3 = pnand %p3891_p0, %p3890_p13  ;;  %p3896_p9 = scmp.lt.u32.totalorder %s3894_s9, %s3889_s6 }
  0x35   : > { %p3898_p1 = scmp.lt.u32.totalorder %s3889_s6, %s4120_s4 }
  0x36   : > { %p3893_p5 = pneg %p3892_p3  ;;  %p3897_p2 = por %p3896_p9, %p3895_p7 }
  0x38   : > { %p3899_p4 = por %p3898_p1, %p3897_p2 }
  0x3a   : > { %p3900_p6 = pnand %p3899_p4, %p3893_p5 }
  0x3c   : > { %3903 = shalt.err (!%p3900_p6)
}
  0x3d   : > { %s3904_s27 = scalar_lea.vmem %s4126_s25, 4096  ;;  %s3994_s28 = smov [#allocation2]  }
  0x3e   : > { %p3905_p8 = scmp.ne.s32.totalorder %s4126_s25, %s3904_s27  ;;  %s3909_s29 = sshll.u32 %s3994_s28, 4  ;;  %s3910_s29 = int_to_ptr.vmem [resolvable:$false] %s3909_s29 }
  0x3f   : > { %s3911_s23 = scalar_lea.vmem %s3910_s29, 8192  ;;  %p3912_p3 = scmp.lt.s32.totalorder %s4126_s25, %s3910_s29 }
  0x40   : > { %p3907_p10 = pnand %p3905_p8, %p3891_p0  ;;  %p3913_p7 = scmp.lt.s32.totalorder %s3911_s23, %s3904_s27 }
  0x42   : > { %p3908_p13 = pneg %p3907_p10  ;;  %p3914_p9 = por %p3913_p7, %p3912_p3 }
  0x44   : > { %p3915_p2 = pnand %p3914_p9, %p3908_p13 }
  0x46   : > { %3918 = shalt.err (!%p3915_p2)
}
  0x47   : > { %s3995_s30 = smov 128   ;;  %s3996_s22 = smov 8  }
  0x48   : > { %3803 = dma.hbm_to_vmem [thread:$0]  (!%p4122_p11), %s4120_s4, 4096, %s4126_s25, %s4128_s5, %s3995_s30, %s3995_s30, %s3996_s22  }
  0x49   : > { %p5073_p0 = scmp.ne.s32.totalorder %s5068_s20, 0 }
  0x4a   : > { %s4159_s6 = sand.u32 (!%p5073_p0), 1, %s3981_s13   ;;  %p5074_p5 = scmp.ne.s32.totalorder (!%p5073_p0), %s5066_s18, 0 }
  0x4b   : > { %171 = sbr.rel (%p5073_p0) target bundleno = 805 (0x325), region = 32  ;;  %s3681_s7 = sshll.u32 (!%p5073_p0), %s4159_s6, 8 }
  0x4c   : > { %s174_s8 = scalar_lea.sflag (!%p5073_p0), [#allocation3], %s4159_s6  ;;  %s4163_s9 = scalar_lea.vmem (!%p5073_p0), [#allocation2], %s3681_s7 }
  0x52   : > { %3964 = dma.done.wait (%p5074_p5), %s174_s8, 4096  }
  0x53   : > { %3966 = vsyncadd (%p5074_p5), %s174_s8, 4294963200  ;;  %p5075_p11 = scmp.eq.s32.totalorder %s4041_s16, 0 }
  0x55   : > { %3968 = dma.done.wait (%p5075_p11), [#allocation6], 1024   ;;  %p5076_p1 = pmov %p5075_p11 }
  0x56   : > { %v3853_v0 = vld [vmem:[#allocation5] sm:$0xff]   ;;  %v3854_v1 = vld [vmem:[#allocation5 + $0x8] sm:$0xff]   ;;  %v3855_v2 = vld [vmem:[#allocation5 + $0x10] sm:$0xff]   ;;  %vm3378_vm0 = vcmask 130112   ;;  %vm3385_vm1 = vcmask 195712   ;;  %vm3392_vm2 = vcmask 261312  }
  0x57   : > { %3970 = vsyncadd (%p5076_p1), [#allocation6], 4294966272  ;;  %3724 = vmatprep.subr.bf16.mxu0 %v3853_v0  ;;  %3772 = vmatprep.subr.bf16.mxu1 %v3853_v0  ;;  %v3856_v3 = vld [vmem:[#allocation5 + $0x18] sm:$0xff]   ;;  %v207_v4 = vld [vmem:[%s4163_s9] sm:$0xff]  ;;  %vm3399_vm3 = vcmask 326912   ;;  %vm3406_vm4 = vcmask 392512  }
  0x58   : > { %3725 = vmatpush3.bf16.msra.mxu0 %v3853_v0  ;;  %3780 = vmatpush3.bf16.msra.mxu1 %v3853_v0  ;;  %v208_v5 = vld [vmem:[%s4163_s9 + $0x8] sm:$0xff]  ;;  %v223_v6 = vld [vmem:[%s4163_s9 + $0x80] sm:$0xff]  ;;  %v3859_v12 = vld [vmem:[#allocation5 + $0x30] sm:$0xff]   ;;  %vm3413_vm5 = vcmask 458112   ;;  %vm3420_vm6 = vcmask 523712   ;;  %vm3427_vm7 = vcmask 589312  }
  0x59   : > { %3726 = vmatprep.subr.bf16.mxu0 %v3854_v1  ;;  %3773 = vmatprep.subr.bf16.mxu1 %v3854_v1  ;;  %v239_v7 = vpack.c.bf16 %v208_v5, %v207_v4  ;;  %v224_v8 = vld [vmem:[%s4163_s9 + $0x88] sm:$0xff]  ;;  %v3857_v10 = vld [vmem:[#allocation5 + $0x20] sm:$0xff]   ;;  %v3860_v13 = vld [vmem:[#allocation5 + $0x38] sm:$0xff]   ;;  %vm3434_vm8 = vcmask 654912   ;;  %vm3441_vm9 = vcmask 720512   ;;  %vm3448_vm10 = vcmask 786112  }
  0x5a   : > { %v247_v9 = vpack.c.bf16 %v224_v8, %v223_v6  ;;  %v3858_v11 = vld [vmem:[#allocation5 + $0x28] sm:$0xff]   ;;  %v209_v14 = vld [vmem:[%s4163_s9 + $0x10] sm:$0xff]  ;;  %v210_v15 = vld [vmem:[%s4163_s9 + $0x18] sm:$0xff]  ;;  %vm3455_vm11 = vcmask 851712   ;;  %vm3462_vm12 = vcmask 917312   ;;  %vm3469_vm13 = vcmask 982912  }
  0x5b   : > { %3740 = vmatprep.mubr.bf16.mxu0 %v239_v7  ;;  %v225_v16 = vld [vmem:[%s4163_s9 + $0x90] sm:$0xff]  ;;  %v226_v17 = vld [vmem:[%s4163_s9 + $0x98] sm:$0xff]  ;;  %v211_v18 = vld [vmem:[%s4163_s9 + $0x20] sm:$0xff]  ;;  %v240_v22 = vpack.c.bf16 %v210_v15, %v209_v14  ;;  %vm3476_vm14 = vcmask 1048512   ;;  %s3683_s4 = sshll.u32 %s4159_s6, 1  ;;  %s3699_s25 = sshll.u32 %s4041_s16, 5 }
  0x5c   : > { %3727 = vmatpush3.bf16.msra.mxu0 %v3854_v1  ;;  %3781 = vmatpush3.bf16.msra.mxu1 %v3854_v1  ;;  %v212_v19 = vld [vmem:[%s4163_s9 + $0x28] sm:$0xff]  ;;  %v227_v20 = vld [vmem:[%s4163_s9 + $0xa0] sm:$0xff]  ;;  %v248_v23 = vpack.c.bf16 %v226_v17, %v225_v16  ;;  %v213_v26 = vld [vmem:[%s4163_s9 + $0x30] sm:$0xff]  ;;  %s203_s26 = scalar_lea.vmem [#allocation7], %s3683_s4  ;;  %s5015_s27 = scalar_lea.hbm %s5062_s3, %s3699_s25 }
  0x5d   : > { %3728 = vmatprep.subr.bf16.mxu0 %v3855_v2  ;;  %3774 = vmatprep.subr.bf16.mxu1 %v3855_v2  ;;  %v228_v21 = vld [vmem:[%s4163_s9 + $0xa8] sm:$0xff]  ;;  %v241_v24 = vpack.c.bf16 %v212_v19, %v211_v18  ;;  %v214_v27 = vld [vmem:[%s4163_s9 + $0x38] sm:$0xff]  ;;  %v229_v28 = vld [vmem:[%s4163_s9 + $0xb0] sm:$0xff]  ;;  %s3593_s5 = sshll.u32 %s203_s26, 4  ;;  %s3579_s16 = scalar_lea.sflag [#allocation4], %s4159_s6  ;;  %s5017_s5 = int_to_ptr.vmem [resolvable:$true] %s3593_s5 }
  0x5e   : > { %3756 = vmatprep.mubr.bf16.mxu1 %v247_v9  ;;  %v249_v25 = vpack.c.bf16 %v228_v21, %v227_v20  ;;  %v230_v29 = vld [vmem:[%s4163_s9 + $0xb8] sm:$0xff]  ;;  %v215_v30 = vld [vmem:[%s4163_s9 + $0x40] sm:$0xff]  ;;  %v216_v31 = vld [vmem:[%s4163_s9 + $0x48] sm:$0xff]  ;;  %v242_v34 = vpack.c.bf16 %v214_v27, %v213_v26  ;;  %s3919_s28 = scalar_lea.vmem %s5017_s5, 32  ;;  %s3999_s29 = smov [#allocation7]  }
  0x5f   : > { %v231_v32 = vld [vmem:[%s4163_s9 + $0xc0] sm:$0xff]  ;;  %v232_v33 = vld [vmem:[%s4163_s9 + $0xc8] sm:$0xff]  ;;  %v250_v35 = vpack.c.bf16 %v230_v29, %v229_v28  ;;  %v243_v36 = vpack.c.bf16 %v216_v31, %v215_v30  ;;  %v217_v38 = vld [vmem:[%s4163_s9 + $0x50] sm:$0xff]  ;;  %p3920_p4 = scmp.ne.s32.totalorder %s5017_s5, %s3919_s28  ;;  %s3923_s23 = sshll.u32 %s3999_s29, 4  ;;  %s3924_s23 = int_to_ptr.vmem [resolvable:$false] %s3923_s23 }
  0x60   : > { %3729 = vmatpush3.bf16.msra.mxu0 %v3855_v2  ;;  %3782 = vmatpush3.bf16.msra.mxu1 %v3855_v2  ;;  %v251_v37 = vpack.c.bf16 %v232_v33, %v231_v32  ;;  %v218_v39 = vld [vmem:[%s4163_s9 + $0x58] sm:$0xff]  ;;  %v233_v40 = vld [vmem:[%s4163_s9 + $0xd0] sm:$0xff]  ;;  %v219_v42 = vld [vmem:[%s4163_s9 + $0x60] sm:$0xff]  ;;  %s3925_s30 = scalar_lea.vmem %s3924_s23, 64  ;;  %p3926_p10 = scmp.lt.s32.totalorder %s5017_s5, %s3924_s23 }
  0x61   : > { %3730 = vmatprep.subr.bf16.mxu0 %v3856_v3  ;;  %3775 = vmatprep.subr.bf16.mxu1 %v3856_v3  ;;  %v234_v41 = vld [vmem:[%s4163_s9 + $0xd8] sm:$0xff]  ;;  %v220_v43 = vld [vmem:[%s4163_s9 + $0x68] sm:$0xff]  ;;  %v235_v44 = vld [vmem:[%s4163_s9 + $0xe0] sm:$0xff]  ;;  %v244_v46 = vpack.c.bf16 %v218_v39, %v217_v38  ;;  %p3921_p6 = pnand %p3920_p4, %p4111_p12  ;;  %p3927_p13 = scmp.lt.s32.totalorder %s3925_s30, %s3919_s28 }
  0x62   : > { %v236_v45 = vld [vmem:[%s4163_s9 + $0xe8] sm:$0xff]  ;;  %v252_v47 = vpack.c.bf16 %v234_v41, %v233_v40  ;;  %v245_v48 = vpack.c.bf16 %v220_v43, %v219_v42  ;;  %v221_v50 = vld [vmem:[%s4163_s9 + $0x70] sm:$0xff]  ;;  %v222_v51 = vld [vmem:[%s4163_s9 + $0x78] sm:$0xff] }
  0x63   : > { %v253_v49 = vpack.c.bf16 %v236_v45, %v235_v44  ;;  %v237_v52 = vld [vmem:[%s4163_s9 + $0xf0] sm:$0xff]  ;;  %v238_v53 = vld [vmem:[%s4163_s9 + $0xf8] sm:$0xff]  ;;  %v246_v54 = vpack.c.bf16 %v222_v51, %v221_v50  ;;  %v4208_v1 = vld [vmem:[%s5061_s2] ss:$0 sm:$0xff]  ;;  %p3922_p8 = pneg %p3921_p6  ;;  %p3928_p3 = por %p3927_p13, %p3926_p10 }
  0x64   : > { %3731 = vmatpush3.bf16.msra.mxu0 %v3856_v3  ;;  %3783 = vmatpush3.bf16.msra.mxu1 %v3856_v3  ;;  %v254_v55 = vpack.c.bf16 %v238_v53, %v237_v52 }
  0x65   : > { %3732 = vmatprep.subr.bf16.mxu0 %v3857_v10  ;;  %3776 = vmatprep.subr.bf16.mxu1 %v3857_v10  ;;  %p3929_p7 = pnand %p3928_p3, %p3922_p8 }
  0x68   : > { %3733 = vmatpush3.bf16.msra.mxu0 %v3857_v10  ;;  %3784 = vmatpush3.bf16.msra.mxu1 %v3857_v10 }
  0x69   : > { %3734 = vmatprep.subr.bf16.mxu0 %v3858_v11  ;;  %3777 = vmatprep.subr.bf16.mxu1 %v3858_v11 }
  0x6c   : > { %3735 = vmatpush3.bf16.msra.mxu0 %v3858_v11  ;;  %3785 = vmatpush3.bf16.msra.mxu1 %v3858_v11 }
  0x6d   : > { %3736 = vmatprep.subr.bf16.mxu0 %v3859_v12  ;;  %3778 = vmatprep.subr.bf16.mxu1 %v3859_v12 }
  0x70   : > { %3737 = vmatpush3.bf16.msra.mxu0 %v3859_v12  ;;  %3786 = vmatpush3.bf16.msra.mxu1 %v3859_v12 }
  0x71   : > { %3738 = vmatprep.subr.bf16.mxu0 %v3860_v13  ;;  %3779 = vmatprep.subr.bf16.mxu1 %v3860_v13 }
  0x74   : > { %3739 = vmatpush3.bf16.msra.mxu0 %v3860_v13  ;;  %3787 = vmatpush3.bf16.msra.mxu1 %v3860_v13 }
  0x77   : > { %3741 = vmatmul.mubr.bf16.vlgmr.msra.gmra.mrb[0].mxu0 %v240_v22  ;;  %3757 = vmatmul.mubr.bf16.vlgmr.msra.gmra.mrb[0].mxu1 %v248_v23 }
  0x78   : > { %3744 = vmatprep.mubr.bf16.mxu0 %v241_v24  ;;  %3760 = vmatprep.mubr.bf16.mxu1 %v249_v25 }
  0x7f   : > { %3745 = vmatmul.mubr.bf16.gmra.mrb[4].mxu0 %v242_v34  ;;  %3761 = vmatmul.mubr.bf16.gmra.mrb[4].mxu1 %v250_v35 }
  0x80   : > { %3748 = vmatprep.mubr.bf16.mxu0 %v243_v36  ;;  %3764 = vmatprep.mubr.bf16.mxu1 %v251_v37 }
  0x87   : > { %3749 = vmatmul.mubr.bf16.gmra.mrb[8].mxu0 %v244_v46  ;;  %3765 = vmatmul.mubr.bf16.gmra.mrb[8].mxu1 %v252_v47 }
  0x88   : > { %3752 = vmatprep.mubr.bf16.mxu0 %v245_v48  ;;  %3768 = vmatprep.mubr.bf16.mxu1 %v253_v49 }
  0x8f   : > { %3753 = vmatmul.mubr.bf16.gmra.mrb[12].mxu0 %v246_v54  ;;  %3769 = vmatmul.mubr.bf16.gmra.mrb[12].mxu1 %v254_v55 }
 0x14a   : > { %v3742_v56 = vpop.f32.mrb[0].mxu0  ;;  %v3758_v57 = vpop.f32.mrb[0].mxu1 }
 0x14b   : > { %v482_v58 = vmul.f32 0.01, %v3742_v56  ;;  %v498_v59 = vmul.f32 0.01, %v3758_v57  ;;  %v353_v60 = vpop.f32.mrb[1].mxu0  ;;  %v417_v61 = vpop.f32.mrb[1].mxu1 }
 0x14c   : > { %v480_v62 = vmul.f32 0.01, %v353_v60  ;;  %v3743_v63 = vpop.f32.mrb[2].mxu0  ;;  %v3759_v0 = vpop.f32.mrb[2].mxu1  ;;  %v496_v7 = vmul.f32 0.01, %v417_v61 }
 0x14d   : > { %v514_v2 = vmax.f32 %v3742_v56, %v482_v58  ;;  %v530_v3 = vmax.f32 %v3758_v57, %v498_v59  ;;  %v483_v4 = vmul.f32 0.01, %v3743_v63  ;;  %v356_v5 = vpop.f32.mrb[3].mxu0  ;;  %v420_v6 = vpop.f32.mrb[3].mxu1  ;;  %v499_v8 = vmul.f32 0.01, %v3759_v0 }
 0x14e   : > { %v512_v9 = vmax.f32 %v353_v60, %v480_v62  ;;  %v481_v13 = vmul.f32 0.01, %v356_v5  ;;  %v497_v14 = vmul.f32 0.01, %v420_v6  ;;  %v528_v17 = vmax.f32 %v417_v61, %v496_v7 }
 0x14f   : > { %v515_v10 = vmax.f32 %v3743_v63, %v483_v4  ;;  %v569_v11 = vmul.f32 %v4208_v1, %v530_v3  ;;  %v553_v12 = vmul.f32 %v4208_v1, %v514_v2  ;;  %v531_v18 = vmax.f32 %v3759_v0, %v499_v8 }
 0x150   : > { %v551_v19 = vmul.f32 %v4208_v1, %v512_v9  ;;  %v513_v27 = vmax.f32 %v356_v5, %v481_v13  ;;  %v529_v28 = vmax.f32 %v420_v6, %v497_v14  ;;  %v567_v31 = vmul.f32 %v4208_v1, %v528_v17 }
 0x151   : > { %619 = vadd.xlane.f32.xlu0 %v569_v11  ;;  %587 = vadd.xlane.f32.xlu1 %v553_v12  ;;  %v554_v20 = vmul.f32 %v4208_v1, %v515_v10  ;;  %v570_v32 = vmul.f32 %v4208_v1, %v531_v18  ;;  %v3997_v12 = vmov 0  }
 0x152   : > { %v3746_v15 = vpop.f32.mrb[4].mxu0  ;;  %v3762_v16 = vpop.f32.mrb[4].mxu1  ;;  %v568_v34 = vmul.f32 %v4208_v1, %v529_v28  ;;  %v552_v40 = vmul.f32 %v4208_v1, %v513_v27  ;;  %3851 = vset.pattern.permute.xlu1 %v3997_v12  ;;  %3852 = vset.pattern.permute.xlu0 %v3997_v12 }
 0x153   : > { %v369_v21 = vpop.f32.mrb[5].mxu0  ;;  %v4214_v22 = vpop.f32.mrb[5].mxu1  ;;  %v486_v29 = vmul.f32 0.01, %v3746_v15  ;;  %v502_v33 = vmul.f32 0.01, %v3762_v16 }
 0x154   : > { %v3747_v23 = vpop.f32.mrb[6].mxu0  ;;  %v3763_v24 = vpop.f32.mrb[6].mxu1  ;;  %v484_v47 = vmul.f32 0.01, %v369_v21  ;;  %v500_v53 = vmul.f32 0.01, %v4214_v22 }
 0x155   : > { %583 = vadd.xlane.f32.xlu0 %v551_v19  ;;  %589 = vadd.xlane.f32.xlu1 %v554_v20  ;;  %v372_v25 = vpop.f32.mrb[7].mxu0  ;;  %v4216_v26 = vpop.f32.mrb[7].mxu1  ;;  %v487_v30 = vmul.f32 0.01, %v3747_v23  ;;  %v518_v37 = vmax.f32 %v3746_v15, %v486_v29  ;;  %v503_v39 = vmul.f32 0.01, %v3763_v24  ;;  %v534_v48 = vmax.f32 %v3762_v16, %v502_v33 }
 0x156   : > { %v485_v49 = vmul.f32 0.01, %v372_v25  ;;  %v501_v54 = vmul.f32 0.01, %v4216_v26  ;;  %v516_v57 = vmax.f32 %v369_v21, %v484_v47  ;;  %v532_v4 = vmax.f32 %v4214_v22, %v500_v53 }
 0x157   : > { %v519_v38 = vmax.f32 %v3747_v23, %v487_v30  ;;  %v535_v50 = vmax.f32 %v3763_v24, %v503_v39  ;;  %v557_v51 = vmul.f32 %v4208_v1, %v518_v37  ;;  %v573_v59 = vmul.f32 %v4208_v1, %v534_v48 }
 0x158   : > { %v517_v58 = vmax.f32 %v372_v25, %v485_v49  ;;  %v533_v5 = vmax.f32 %v4216_v26, %v501_v54  ;;  %v555_v8 = vmul.f32 %v4208_v1, %v516_v57  ;;  %v571_v11 = vmul.f32 %v4208_v1, %v532_v4 }
 0x159   : > { %615 = vadd.xlane.f32.xlu0 %v567_v31  ;;  %621 = vadd.xlane.f32.xlu1 %v570_v32  ;;  %v558_v52 = vmul.f32 %v4208_v1, %v519_v38  ;;  %v574_v60 = vmul.f32 %v4208_v1, %v535_v50 }
 0x15a   : > { %v3750_v35 = vpop.f32.mrb[8].mxu0  ;;  %v4221_v36 = vpop.f32.mrb[8].mxu1  ;;  %v556_v9 = vmul.f32 %v4208_v1, %v517_v58  ;;  %v572_v16 = vmul.f32 %v4208_v1, %v533_v5 }
 0x15b   : > { %v4224_v41 = vpop.f32.mrb[9].mxu0  ;;  %v4226_v42 = vpop.f32.mrb[9].mxu1  ;;  %v490_v6 = vmul.f32 0.01, %v3750_v35  ;;  %v506_v10 = vmul.f32 0.01, %v4221_v36 }
 0x15c   : > { %v3751_v43 = vpop.f32.mrb[10].mxu0  ;;  %v3767_v44 = vpop.f32.mrb[10].mxu1  ;;  %v488_v17 = vmul.f32 0.01, %v4224_v41  ;;  %v504_v23 = vmul.f32 0.01, %v4226_v42 }
 0x15d   : > { %617 = vadd.xlane.f32.xlu1 %v568_v34  ;;  %585 = vadd.xlane.f32.xlu0 %v552_v40  ;;  %v4228_v45 = vpop.f32.mrb[11].mxu0  ;;  %v4230_v46 = vpop.f32.mrb[11].mxu1  ;;  %v491_v7 = vmul.f32 0.01, %v3751_v43  ;;  %v522_v13 = vmax.f32 %v3750_v35, %v490_v6  ;;  %v507_v15 = vmul.f32 0.01, %v3767_v44  ;;  %v538_v18 = vmax.f32 %v4221_v36, %v506_v10 }
 0x15e   : > { %v489_v19 = vmul.f32 0.01, %v4228_v45  ;;  %v505_v24 = vmul.f32 0.01, %v4230_v46  ;;  %v520_v25 = vmax.f32 %v4224_v41, %v488_v17  ;;  %v536_v29 = vmax.f32 %v4226_v42, %v504_v23 }
 0x15f   : > { %v523_v14 = vmax.f32 %v3751_v43, %v491_v7  ;;  %v539_v20 = vmax.f32 %v3767_v44, %v507_v15  ;;  %v561_v21 = vmul.f32 %v4208_v1, %v522_v13  ;;  %v577_v27 = vmul.f32 %v4208_v1, %v538_v18 }
 0x160   : > { %v521_v26 = vmax.f32 %v4228_v45, %v489_v19  ;;  %v537_v30 = vmax.f32 %v4230_v46, %v505_v24  ;;  %v559_v33 = vmul.f32 %v4208_v1, %v520_v25  ;;  %v575_v36 = vmul.f32 %v4208_v1, %v536_v29 }
 0x161   : > { %595 = vadd.xlane.f32.xlu0 %v557_v51  ;;  %597 = vadd.xlane.f32.xlu1 %v558_v52  ;;  %v562_v22 = vmul.f32 %v4208_v1, %v523_v14  ;;  %v578_v28 = vmul.f32 %v4208_v1, %v539_v20 }
 0x162   : > { %v4236_v55 = vpop.f32.mrb[12].mxu0  ;;  %v4238_v56 = vpop.f32.mrb[12].mxu1  ;;  %v560_v34 = vmul.f32 %v4208_v1, %v521_v26  ;;  %v576_v40 = vmul.f32 %v4208_v1, %v537_v30 }
 0x163   : > { %v4242_v61 = vpop.f32.mrb[13].mxu0  ;;  %v4244_v62 = vpop.f32.mrb[13].mxu1  ;;  %v494_v31 = vmul.f32 0.01, %v4236_v55  ;;  %v510_v48 = vmul.f32 0.01, %v4238_v56 }
 0x164   : > { %v4246_v63 = vpop.f32.mrb[14].mxu0  ;;  %v4248_v0 = vpop.f32.mrb[14].mxu1  ;;  %v492_v38 = vmul.f32 0.01, %v4242_v61  ;;  %v508_v42 = vmul.f32 0.01, %v4244_v62 }
 0x165   : > { %627 = vadd.xlane.f32.xlu0 %v573_v59  ;;  %629 = vadd.xlane.f32.xlu1 %v574_v60  ;;  %v4250_v2 = vpop.f32.mrb[15].mxu0  ;;  %v4252_v3 = vpop.f32.mrb[15].mxu1  ;;  %v495_v32 = vmul.f32 0.01, %v4246_v63  ;;  %v511_v35 = vmul.f32 0.01, %v4248_v0  ;;  %v526_v37 = vmax.f32 %v4236_v55, %v494_v31  ;;  %v542_v53 = vmax.f32 %v4238_v56, %v510_v48 }
 0x166   : > { %v524_v43 = vmax.f32 %v4242_v61, %v492_v38  ;;  %v493_v44 = vmul.f32 0.01, %v4250_v2  ;;  %v540_v50 = vmax.f32 %v4244_v62, %v508_v42  ;;  %v509_v51 = vmul.f32 0.01, %v4252_v3 }
 0x167   : > { %v527_v39 = vmax.f32 %v4246_v63, %v495_v32  ;;  %v543_v41 = vmax.f32 %v4248_v0, %v511_v35  ;;  %v565_v45 = vmul.f32 %v4208_v1, %v526_v37  ;;  %v581_v58 = vmul.f32 %v4208_v1, %v542_v53 }
 0x168   : > { %v525_v49 = vmax.f32 %v4250_v2, %v493_v44  ;;  %v563_v52 = vmul.f32 %v4208_v1, %v524_v43  ;;  %v541_v54 = vmax.f32 %v4252_v3, %v509_v51  ;;  %v579_v55 = vmul.f32 %v4208_v1, %v540_v50 }
 0x169   : > { %591 = vadd.xlane.f32.xlu0 %v555_v8  ;;  %593 = vadd.xlane.f32.xlu1 %v556_v9  ;;  %v566_v46 = vmul.f32 %v4208_v1, %v527_v39  ;;  %v582_v47 = vmul.f32 %v4208_v1, %v543_v41  ;;  %v679_v60 = vlaneseq  ;;  %v3998_v61 = vmov 1966171168  }
 0x16a   : > { %v564_v57 = vmul.f32 %v4208_v1, %v525_v49  ;;  %v580_v59 = vmul.f32 %v4208_v1, %v541_v54  ;;  %v1708_v62 = vunpack.c.l.s4 %v3998_v61 }
 0x16b   : > { %v4303_v63 = vshrl.u32 %v679_v60, 7  ;;  %vm3575_vm15 = vcmp.lt.s32.totalorder %v679_v60, 256 }
 0x16c   : > { %v1709_v56 = vunpack.c.0.s8 %v1708_v62 }
 0x16d   : > { %623 = vadd.xlane.f32.xlu0 %v571_v11  ;;  %625 = vadd.xlane.f32.xlu1 %v572_v16  ;;  %v4306_v0 = vsub.s32 0, %v4303_v63  ;;  %v4309_v2 = vsub.s32 1, %v4303_v63  ;;  %v4312_v3 = vsub.s32 2, %v4303_v63  ;;  %v4315_v1 = vsub.s32 3, %v4303_v63 }
 0x16e   : > { %v4318_v4 = vsub.s32 4, %v4303_v63  ;;  %v4321_v5 = vsub.s32 5, %v4303_v63  ;;  %v4324_v6 = vsub.s32 6, %v4303_v63  ;;  %v4327_v7 = vsub.s32 7, %v4303_v63 }
 0x16f   : > { %v4330_v10 = vsub.s32 %v1709_v56, %v4303_v63 }
 0x171   : > { %603 = vadd.xlane.f32.xlu0 %v561_v21  ;;  %605 = vadd.xlane.f32.xlu1 %v562_v22 }
 0x175   : > { %635 = vadd.xlane.f32.xlu0 %v577_v27  ;;  %637 = vadd.xlane.f32.xlu1 %v578_v28 }
 0x179   : > { %599 = vadd.xlane.f32.xlu0 %v559_v33  ;;  %601 = vadd.xlane.f32.xlu1 %v560_v34 }
 0x17d   : > { %631 = vadd.xlane.f32.xlu0 %v575_v36  ;;  %633 = vadd.xlane.f32.xlu1 %v576_v40 }
 0x181   : > { %611 = vadd.xlane.f32.xlu0 %v565_v45  ;;  %613 = vadd.xlane.f32.xlu1 %v566_v46 }
 0x185   : > { %607 = vadd.xlane.f32.xlu0 %v563_v52  ;;  %645 = vadd.xlane.f32.xlu1 %v582_v47 }
 0x189   : > { %639 = vadd.xlane.f32.xlu0 %v579_v55  ;;  %609 = vadd.xlane.f32.xlu1 %v564_v57 }
 0x18d   : > { %643 = vadd.xlane.f32.xlu0 %v581_v58  ;;  %641 = vadd.xlane.f32.xlu1 %v580_v59 }
 0x1de   : > { %v620_v8 = vpop.xlane.xlu0 %619  ;;  %v588_v9 = vpop.xlane.xlu1 %587 }
 0x1df   : > { %v746_v11 = vrot.slane %v588_v9, %v4306_v0  ;;  %v750_v12 = vrot.slane %v588_v9, %v4309_v2  ;;  %v754_v13 = vrot.slane %v588_v9, %v4312_v3  ;;  %v758_v14 = vrot.slane %v588_v9, %v4315_v1 }
 0x1e0   : > { %v762_v15 = vrot.slane %v588_v9, %v4318_v4  ;;  %v766_v16 = vrot.slane %v588_v9, %v4321_v5  ;;  %v770_v17 = vrot.slane %v588_v9, %v4324_v6  ;;  %v774_v18 = vrot.slane %v588_v9, %v4327_v7 }
 0x1e1   : > { %v1801_v19 = vcombine.low %v746_v11, %v750_v12  ;;  %v1802_v20 = vcombine.low %v754_v13, %v758_v14  ;;  %v1258_v21 = vrot.slane %v620_v8, %v4306_v0  ;;  %v1262_v22 = vrot.slane %v620_v8, %v4309_v2 }
 0x1e2   : > { %v584_v23 = vpop.xlane.xlu0 %583  ;;  %v4342_v24 = vpop.xlane.xlu1 %589  ;;  %v1803_v25 = vcombine.low %v762_v15, %v766_v16  ;;  %v1804_v26 = vcombine.low %v770_v17, %v774_v18  ;;  %v1266_v27 = vrot.slane %v620_v8, %v4312_v3  ;;  %v1270_v28 = vrot.slane %v620_v8, %v4315_v1 }
 0x1e3   : > { %v1811_v29 = vrot.slane %v1801_v19, %v4330_v10  ;;  %v1818_v30 = vrot.slane %v1802_v20, %v4330_v10  ;;  %v682_v31 = vrot.slane %v584_v23, %v4306_v0  ;;  %v686_v32 = vrot.slane %v584_v23, %v4309_v2 }
 0x1e4   : > { %v1825_v33 = vrot.slane %v1803_v25, %v4330_v10  ;;  %v1832_v34 = vrot.slane %v1804_v26, %v4330_v10  ;;  %v690_v35 = vrot.slane %v584_v23, %v4312_v3  ;;  %v694_v36 = vrot.slane %v584_v23, %v4315_v1 }
 0x1e5   : > { %v1833_v37 = vcombine.low %v1811_v29, %v1818_v30  ;;  %v698_v38 = vrot.slane %v584_v23, %v4318_v4  ;;  %v702_v39 = vrot.slane %v584_v23, %v4321_v5  ;;  %v706_v40 = vrot.slane %v584_v23, %v4324_v6 }
 0x1e6   : > { %v1834_v41 = vcombine.low %v1825_v33, %v1832_v34  ;;  %v710_v42 = vrot.slane %v584_v23, %v4327_v7  ;;  %v1703_v43 = vcombine.low %v682_v31, %v686_v32  ;;  %v1704_v44 = vcombine.low %v690_v35, %v694_v36  ;;  %v622_v49 = vpop.xlane.xlu1 %621 }
 0x1e7   : > { %v1841_v45 = vrot.slane %v1833_v37, %v4330_v10  ;;  %v1705_v46 = vcombine.low %v698_v38, %v702_v39  ;;  %v1274_v47 = vrot.slane %v620_v8, %v4318_v4  ;;  %v1278_v48 = vrot.slane %v620_v8, %v4321_v5 }
 0x1e8   : > { %v1848_v50 = vrot.slane %v1834_v41, %v4330_v10  ;;  %v1706_v51 = vcombine.low %v706_v40, %v710_v42  ;;  %v1713_v52 = vrot.slane %v1703_v43, %v4330_v10  ;;  %v1720_v53 = vrot.slane %v1704_v44, %v4330_v10 }
 0x1e9   : > { %v1727_v54 = vrot.slane %v1705_v46, %v4330_v10  ;;  %v1282_v55 = vrot.slane %v620_v8, %v4324_v6  ;;  %v1286_v57 = vrot.slane %v620_v8, %v4327_v7  ;;  %v2585_v58 = vcombine.low %v1258_v21, %v1262_v22  ;;  %v616_v21 = vpop.xlane.xlu0 %615 }
 0x1ea   : > { %v1849_v59 = vcombine.low %v1841_v45, %v1848_v50  ;;  %v1734_v61 = vrot.slane %v1706_v51, %v4330_v10  ;;  %v1735_v62 = vcombine.low %v1713_v52, %v1720_v53  ;;  %v2586_v56 = vcombine.low %v1266_v27, %v1270_v28  ;;  %v618_v39 = vpop.xlane.xlu1 %617 }
 0x1eb   : > { %v2587_v9 = vcombine.low %v1274_v47, %v1278_v48  ;;  %v2588_v11 = vcombine.low %v1282_v55, %v1286_v57  ;;  %v2595_v12 = vrot.slane %v2585_v58, %v4330_v10  ;;  %v1290_v13 = vrot.slane %v622_v49, %v4306_v0 }
 0x1ec   : > { %3278 = vperm.xlu1 %3851, %v1849_v59   ;;  %v1736_v14 = vcombine.low %v1727_v54, %v1734_v61  ;;  %v1743_v15 = vrot.slane %v1735_v62, %v4330_v10  ;;  %v2602_v16 = vrot.slane %v2586_v56, %v4330_v10  ;;  %v1294_v8 = vrot.slane %v622_v49, %v4309_v2 }
 0x1ed   : > { %v2609_v17 = vrot.slane %v2587_v9, %v4330_v10  ;;  %v2616_v18 = vrot.slane %v2588_v11, %v4330_v10  ;;  %v1298_v19 = vrot.slane %v622_v49, %v4312_v3  ;;  %v1302_v20 = vrot.slane %v622_v49, %v4315_v1 }
 0x1ee   : > { %v1750_v22 = vrot.slane %v1736_v14, %v4330_v10  ;;  %v2617_v23 = vcombine.low %v2595_v12, %v2602_v16  ;;  %v1306_v25 = vrot.slane %v622_v49, %v4318_v4  ;;  %v1310_v26 = vrot.slane %v622_v49, %v4321_v5 }
 0x1ef   : > { %v2618_v27 = vcombine.low %v2609_v17, %v2616_v18  ;;  %v1314_v28 = vrot.slane %v622_v49, %v4324_v6  ;;  %v1318_v29 = vrot.slane %v622_v49, %v4327_v7  ;;  %v2634_v30 = vcombine.low %v1290_v13, %v1294_v8 }
 0x1f0   : > { %v1751_v31 = vcombine.low %v1743_v15, %v1750_v22  ;;  %v2625_v32 = vrot.slane %v2617_v23, %v4330_v10  ;;  %v2635_v33 = vcombine.low %v1298_v19, %v1302_v20  ;;  %v2636_v34 = vcombine.low %v1306_v25, %v1310_v26 }
 0x1f1   : > { %v2632_v35 = vrot.slane %v2618_v27, %v4330_v10  ;;  %v2637_v36 = vcombine.low %v1314_v28, %v1318_v29  ;;  %v2644_v37 = vrot.slane %v2634_v30, %v4330_v10  ;;  %v1194_v38 = vrot.slane %v616_v21, %v4306_v0 }
 0x1f2   : > { %3272 = vperm.xlu0 %3852, %v1751_v31   ;;  %v2651_v40 = vrot.slane %v2635_v33, %v4330_v10  ;;  %v2658_v41 = vrot.slane %v2636_v34, %v4330_v10  ;;  %v1198_v42 = vrot.slane %v616_v21, %v4309_v2  ;;  %v1202_v43 = vrot.slane %v616_v21, %v4312_v3  ;;  %v4418_v33 = vpop.xlane.xlu1 %597 }
 0x1f3   : > { %v2633_v44 = vcombine.low %v2625_v32, %v2632_v35  ;;  %v2665_v45 = vrot.slane %v2637_v36, %v4330_v10  ;;  %v1206_v46 = vrot.slane %v616_v21, %v4315_v1  ;;  %v1210_v47 = vrot.slane %v616_v21, %v4318_v4  ;;  %v586_v32 = vpop.xlane.xlu0 %585 }
 0x1f4   : > { %v2666_v48 = vcombine.low %v2644_v37, %v2651_v40  ;;  %v1214_v49 = vrot.slane %v616_v21, %v4321_v5  ;;  %v1218_v50 = vrot.slane %v616_v21, %v4324_v6  ;;  %v1222_v51 = vrot.slane %v616_v21, %v4327_v7 }
 0x1f5   : > { %3326 = vperm.xlu1 %3851, %v2633_v44   ;;  %v2667_v52 = vcombine.low %v2658_v41, %v2665_v45  ;;  %v2487_v53 = vcombine.low %v1194_v38, %v1198_v42  ;;  %v2488_v54 = vcombine.low %v1202_v43, %v1206_v46  ;;  %v1226_v55 = vrot.slane %v618_v39, %v4306_v0 }
 0x1f6   : > { %v2674_v57 = vrot.slane %v2666_v48, %v4330_v10  ;;  %v2489_v58 = vcombine.low %v1210_v47, %v1214_v49  ;;  %v2490_v59 = vcombine.low %v1218_v50, %v1222_v51  ;;  %v1230_v61 = vrot.slane %v618_v39, %v4309_v2 }
 0x1f7   : > { %v2681_v62 = vrot.slane %v2667_v52, %v4330_v10  ;;  %v2497_v56 = vrot.slane %v2487_v53, %v4330_v10  ;;  %v2504_v9 = vrot.slane %v2488_v54, %v4330_v10  ;;  %v1234_v11 = vrot.slane %v618_v39, %v4312_v3 }
 0x1f8   : > { %v2511_v12 = vrot.slane %v2489_v58, %v4330_v10  ;;  %v2518_v13 = vrot.slane %v2490_v59, %v4330_v10  ;;  %v1238_v14 = vrot.slane %v618_v39, %v4315_v1  ;;  %v1242_v15 = vrot.slane %v618_v39, %v4318_v4  ;;  %v630_v58 = vpop.xlane.xlu1 %629 }
 0x1f9   : > { %v2682_v16 = vcombine.low %v2674_v57, %v2681_v62  ;;  %v2519_v8 = vcombine.low %v2497_v56, %v2504_v9  ;;  %v1246_v17 = vrot.slane %v618_v39, %v4321_v5  ;;  %v1250_v18 = vrot.slane %v618_v39, %v4324_v6  ;;  %v596_v9 = vpop.xlane.xlu0 %595 }
 0x1fa   : > { %v2520_v19 = vcombine.low %v2511_v12, %v2518_v13  ;;  %v1254_v20 = vrot.slane %v618_v39, %v4327_v7  ;;  %v2536_v21 = vcombine.low %v1226_v55, %v1230_v61  ;;  %v2537_v22 = vcombine.low %v1234_v11, %v1238_v14 }
 0x1fb   : > { %3329 = vperm.xlu0 %3852, %v2682_v16   ;;  %v2527_v23 = vrot.slane %v2519_v8, %v4330_v10  ;;  %v2538_v25 = vcombine.low %v1242_v15, %v1246_v17  ;;  %v778_v26 = vrot.slane %v4342_v24, %v4306_v0  ;;  %v782_v27 = vrot.slane %v4342_v24, %v4309_v2 }
 0x1fc   : > { %v2534_v28 = vrot.slane %v2520_v19, %v4330_v10  ;;  %v2539_v29 = vcombine.low %v1250_v18, %v1254_v20  ;;  %v2546_v30 = vrot.slane %v2536_v21, %v4330_v10  ;;  %v2553_v31 = vrot.slane %v2537_v22, %v4330_v10 }
 0x1fd   : > { %v2560_v34 = vrot.slane %v2538_v25, %v4330_v10  ;;  %v786_v35 = vrot.slane %v4342_v24, %v4312_v3  ;;  %v790_v36 = vrot.slane %v4342_v24, %v4315_v1  ;;  %v794_v37 = vrot.slane %v4342_v24, %v4318_v4 }
 0x1fe   : > { %v2535_v38 = vcombine.low %v2527_v23, %v2534_v28  ;;  %v2567_v39 = vrot.slane %v2539_v29, %v4330_v10  ;;  %v2568_v40 = vcombine.low %v2546_v30, %v2553_v31  ;;  %v798_v41 = vrot.slane %v4342_v24, %v4321_v5 }
 0x1ff   : > { %v802_v42 = vrot.slane %v4342_v24, %v4324_v6  ;;  %v806_v43 = vrot.slane %v4342_v24, %v4327_v7  ;;  %v1850_v44 = vcombine.low %v778_v26, %v782_v27  ;;  %v1851_v45 = vcombine.low %v786_v35, %v790_v36  ;;  %v628_v36 = vpop.xlane.xlu0 %627 }
 0x200   : > { %3320 = vperm.xlu1 %3851, %v2535_v38   ;;  %v2569_v46 = vcombine.low %v2560_v34, %v2567_v39  ;;  %v2576_v47 = vrot.slane %v2568_v40, %v4330_v10  ;;  %v1852_v48 = vcombine.low %v794_v37, %v798_v41  ;;  %v714_v49 = vrot.slane %v586_v32, %v4306_v0 }
 0x201   : > { %v1853_v50 = vcombine.low %v802_v42, %v806_v43  ;;  %v1860_v51 = vrot.slane %v1850_v44, %v4330_v10  ;;  %v1867_v52 = vrot.slane %v1851_v45, %v4330_v10  ;;  %v718_v53 = vrot.slane %v586_v32, %v4309_v2  ;;  %v4465_v45 = vpop.xlane.xlu1 %593 }
 0x202   : > { %v2583_v54 = vrot.slane %v2569_v46, %v4330_v10  ;;  %v1874_v24 = vrot.slane %v1852_v48, %v4330_v10  ;;  %v722_v55 = vrot.slane %v586_v32, %v4312_v3  ;;  %v726_v57 = vrot.slane %v586_v32, %v4315_v1 }
 0x203   : > { %v1881_v59 = vrot.slane %v1853_v50, %v4330_v10  ;;  %v1882_v61 = vcombine.low %v1860_v51, %v1867_v52  ;;  %v730_v62 = vrot.slane %v586_v32, %v4318_v4  ;;  %v734_v56 = vrot.slane %v586_v32, %v4321_v5 }
 0x204   : > { %v2584_v11 = vcombine.low %v2576_v47, %v2583_v54  ;;  %v738_v12 = vrot.slane %v586_v32, %v4324_v6  ;;  %v742_v13 = vrot.slane %v586_v32, %v4327_v7  ;;  %v1752_v14 = vcombine.low %v714_v49, %v718_v53 }
 0x205   : > { %v1883_v15 = vcombine.low %v1874_v24, %v1881_v59  ;;  %v1890_v16 = vrot.slane %v1882_v61, %v4330_v10  ;;  %v1753_v8 = vcombine.low %v722_v55, %v726_v57  ;;  %v1754_v17 = vcombine.low %v730_v62, %v734_v56  ;;  %v4478_v56 = vpop.xlane.xlu0 %591 }
 0x206   : > { %3323 = vperm.xlu0 %3852, %v2584_v11   ;;  %v1755_v18 = vcombine.low %v738_v12, %v742_v13  ;;  %v1762_v19 = vrot.slane %v1752_v14, %v4330_v10  ;;  %v1418_v20 = vrot.slane %v630_v58, %v4306_v0  ;;  %v1422_v21 = vrot.slane %v630_v58, %v4309_v2 }
 0x207   : > { %v1897_v22 = vrot.slane %v1883_v15, %v4330_v10  ;;  %v1769_v23 = vrot.slane %v1753_v8, %v4330_v10  ;;  %v1776_v25 = vrot.slane %v1754_v17, %v4330_v10  ;;  %v1426_v26 = vrot.slane %v630_v58, %v4312_v3 }
 0x208   : > { %v1783_v27 = vrot.slane %v1755_v18, %v4330_v10  ;;  %v1430_v28 = vrot.slane %v630_v58, %v4315_v1  ;;  %v1434_v29 = vrot.slane %v630_v58, %v4318_v4  ;;  %v1438_v30 = vrot.slane %v630_v58, %v4321_v5 }
 0x209   : > { %v1898_v31 = vcombine.low %v1890_v16, %v1897_v22  ;;  %v1784_v32 = vcombine.low %v1762_v19, %v1769_v23  ;;  %v1442_v34 = vrot.slane %v630_v58, %v4324_v6  ;;  %v1446_v35 = vrot.slane %v630_v58, %v4327_v7 }
 0x20a   : > { %v1785_v37 = vcombine.low %v1776_v25, %v1783_v27  ;;  %v2830_v38 = vcombine.low %v1418_v20, %v1422_v21  ;;  %v2831_v39 = vcombine.low %v1426_v26, %v1430_v28  ;;  %v2832_v40 = vcombine.low %v1434_v29, %v1438_v30 }
 0x20b   : > { %3281 = vperm.xlu1 %3851, %v1898_v31   ;;  %v1792_v41 = vrot.slane %v1784_v32, %v4330_v10  ;;  %v2833_v42 = vcombine.low %v1442_v34, %v1446_v35  ;;  %v874_v43 = vrot.slane %v596_v9, %v4306_v0  ;;  %v878_v44 = vrot.slane %v596_v9, %v4309_v2 }
 0x20c   : > { %v1799_v46 = vrot.slane %v1785_v37, %v4330_v10  ;;  %v2840_v47 = vrot.slane %v2830_v38, %v4330_v10  ;;  %v2847_v48 = vrot.slane %v2831_v39, %v4330_v10  ;;  %v2854_v49 = vrot.slane %v2832_v40, %v4330_v10  ;;  %v4496_v37 = vpop.xlane.xlu0 %623 }
 0x20d   : > { %v2861_v50 = vrot.slane %v2833_v42, %v4330_v10  ;;  %v882_v51 = vrot.slane %v596_v9, %v4312_v3  ;;  %v886_v52 = vrot.slane %v596_v9, %v4315_v1  ;;  %v890_v53 = vrot.slane %v596_v9, %v4318_v4 }
 0x20e   : > { %v1800_v54 = vcombine.low %v1792_v41, %v1799_v46  ;;  %v2862_v24 = vcombine.low %v2840_v47, %v2847_v48  ;;  %v894_v55 = vrot.slane %v596_v9, %v4321_v5  ;;  %v898_v57 = vrot.slane %v596_v9, %v4324_v6 }
 0x20f   : > { %v2863_v58 = vcombine.low %v2854_v49, %v2861_v50  ;;  %v902_v59 = vrot.slane %v596_v9, %v4327_v7  ;;  %v1997_v61 = vcombine.low %v874_v43, %v878_v44  ;;  %v1998_v62 = vcombine.low %v882_v51, %v886_v52  ;;  %v626_v9 = vpop.xlane.xlu1 %625 }
 0x210   : > { %3275 = vperm.xlu1 %3851, %v1800_v54   ;;  %v2870_v11 = vrot.slane %v2862_v24, %v4330_v10  ;;  %v1999_v12 = vcombine.low %v890_v53, %v894_v55  ;;  %v1386_v13 = vrot.slane %v628_v36, %v4306_v0  ;;  %v1390_v14 = vrot.slane %v628_v36, %v4309_v2 }
 0x211   : > { %v2877_v15 = vrot.slane %v2863_v58, %v4330_v10  ;;  %v2000_v16 = vcombine.low %v898_v57, %v902_v59  ;;  %v2007_v8 = vrot.slane %v1997_v61, %v4330_v10  ;;  %v2014_v17 = vrot.slane %v1998_v62, %v4330_v10 }
 0x212   : > { %v2021_v18 = vrot.slane %v1999_v12, %v4330_v10  ;;  %v1394_v19 = vrot.slane %v628_v36, %v4312_v3  ;;  %v1398_v20 = vrot.slane %v628_v36, %v4315_v1  ;;  %v1402_v21 = vrot.slane %v628_v36, %v4318_v4 }
 0x213   : > { %v2878_v22 = vcombine.low %v2870_v11, %v2877_v15  ;;  %v2028_v23 = vrot.slane %v2000_v16, %v4330_v10  ;;  %v2029_v25 = vcombine.low %v2007_v8, %v2014_v17  ;;  %v1406_v26 = vrot.slane %v628_v36, %v4321_v5  ;;  %v4516_v11 = vpop.xlane.xlu0 %603 }
 0x214   : > { %v1410_v27 = vrot.slane %v628_v36, %v4324_v6  ;;  %v1414_v28 = vrot.slane %v628_v36, %v4327_v7  ;;  %v2781_v29 = vcombine.low %v1386_v13, %v1390_v14  ;;  %v2782_v30 = vcombine.low %v1394_v19, %v1398_v20 }
 0x215   : > { %3341 = vperm.xlu0 %3852, %v2878_v22   ;;  %v2030_v31 = vcombine.low %v2021_v18, %v2028_v23  ;;  %v2037_v32 = vrot.slane %v2029_v25, %v4330_v10  ;;  %v2783_v34 = vcombine.low %v1402_v21, %v1406_v26  ;;  %v1354_v35 = vrot.slane %v626_v9, %v4306_v0 }
 0x216   : > { %v2784_v38 = vcombine.low %v1410_v27, %v1414_v28  ;;  %v2791_v39 = vrot.slane %v2781_v29, %v4330_v10  ;;  %v2798_v40 = vrot.slane %v2782_v30, %v4330_v10  ;;  %v1358_v41 = vrot.slane %v626_v9, %v4309_v2 }
 0x217   : > { %v2044_v36 = vrot.slane %v2030_v31, %v4330_v10  ;;  %v2805_v42 = vrot.slane %v2783_v34, %v4330_v10  ;;  %v1362_v43 = vrot.slane %v626_v9, %v4312_v3  ;;  %v1366_v44 = vrot.slane %v626_v9, %v4315_v1 }
 0x218   : > { %v2812_v46 = vrot.slane %v2784_v38, %v4330_v10  ;;  %v2813_v47 = vcombine.low %v2791_v39, %v2798_v40  ;;  %v1370_v48 = vrot.slane %v626_v9, %v4318_v4  ;;  %v1374_v49 = vrot.slane %v626_v9, %v4321_v5 }
 0x219   : > { %v2045_v50 = vcombine.low %v2037_v32, %v2044_v36  ;;  %v1378_v51 = vrot.slane %v626_v9, %v4324_v6  ;;  %v1382_v52 = vrot.slane %v626_v9, %v4327_v7  ;;  %v2732_v53 = vcombine.low %v1354_v35, %v1358_v41  ;;  %v636_v35 = vpop.xlane.xlu0 %635 }
 0x21a   : > { %v2814_v54 = vcombine.low %v2805_v42, %v2812_v46  ;;  %v2821_v24 = vrot.slane %v2813_v47, %v4330_v10  ;;  %v2733_v55 = vcombine.low %v1362_v43, %v1366_v44  ;;  %v2734_v57 = vcombine.low %v1370_v48, %v1374_v49 }
 0x21b   : > { %3290 = vperm.xlu1 %3851, %v2045_v50   ;;  %v2735_v58 = vcombine.low %v1378_v51, %v1382_v52  ;;  %v2742_v59 = vrot.slane %v2732_v53, %v4330_v10  ;;  %v810_v61 = vrot.slane %v4478_v56, %v4306_v0  ;;  %v814_v62 = vrot.slane %v4478_v56, %v4309_v2 }
 0x21c   : > { %v2828_v12 = vrot.slane %v2814_v54, %v4330_v10  ;;  %v2749_v13 = vrot.slane %v2733_v55, %v4330_v10  ;;  %v2756_v14 = vrot.slane %v2734_v57, %v4330_v10  ;;  %v818_v15 = vrot.slane %v4478_v56, %v4312_v3 }
 0x21d   : > { %v2763_v16 = vrot.slane %v2735_v58, %v4330_v10  ;;  %v822_v8 = vrot.slane %v4478_v56, %v4315_v1  ;;  %v826_v17 = vrot.slane %v4478_v56, %v4318_v4  ;;  %v830_v9 = vrot.slane %v4478_v56, %v4321_v5  ;;  %v4562_v58 = vpop.xlane.xlu1 %605 }
 0x21e   : > { %v2829_v18 = vcombine.low %v2821_v24, %v2828_v12  ;;  %v2764_v19 = vcombine.low %v2742_v59, %v2749_v13  ;;  %v834_v20 = vrot.slane %v4478_v56, %v4324_v6  ;;  %v838_v21 = vrot.slane %v4478_v56, %v4327_v7 }
 0x21f   : > { %v2765_v22 = vcombine.low %v2756_v14, %v2763_v16  ;;  %v1899_v23 = vcombine.low %v810_v61, %v814_v62  ;;  %v1900_v25 = vcombine.low %v818_v15, %v822_v8  ;;  %v1901_v26 = vcombine.low %v826_v17, %v830_v9 }
 0x220   : > { %3338 = vperm.xlu1 %3851, %v2829_v18   ;;  %v2772_v27 = vrot.slane %v2764_v19, %v4330_v10  ;;  %v1902_v28 = vcombine.low %v834_v20, %v838_v21  ;;  %v1322_v29 = vrot.slane %v4496_v37, %v4306_v0  ;;  %v1326_v30 = vrot.slane %v4496_v37, %v4309_v2 }
 0x221   : > { %v2779_v31 = vrot.slane %v2765_v22, %v4330_v10  ;;  %v1909_v32 = vrot.slane %v1899_v23, %v4330_v10  ;;  %v1916_v56 = vrot.slane %v1900_v25, %v4330_v10  ;;  %v1923_v34 = vrot.slane %v1901_v26, %v4330_v10 }
 0x222   : > { %v1930_v38 = vrot.slane %v1902_v28, %v4330_v10  ;;  %v1330_v39 = vrot.slane %v4496_v37, %v4312_v3  ;;  %v1334_v40 = vrot.slane %v4496_v37, %v4315_v1  ;;  %v1338_v41 = vrot.slane %v4496_v37, %v4318_v4 }
 0x223   : > { %v2780_v36 = vcombine.low %v2772_v27, %v2779_v31  ;;  %v1931_v42 = vcombine.low %v1909_v32, %v1916_v56  ;;  %v1342_v43 = vrot.slane %v4496_v37, %v4321_v5  ;;  %v1346_v44 = vrot.slane %v4496_v37, %v4324_v6  ;;  %v638_v31 = vpop.xlane.xlu1 %637 }
 0x224   : > { %v1932_v46 = vcombine.low %v1923_v34, %v1930_v38  ;;  %v1350_v47 = vrot.slane %v4496_v37, %v4327_v7  ;;  %v2683_v48 = vcombine.low %v1322_v29, %v1326_v30  ;;  %v2684_v49 = vcombine.low %v1330_v39, %v1334_v40 }
 0x225   : > { %3335 = vperm.xlu0 %3852, %v2780_v36   ;;  %v1939_v50 = vrot.slane %v1931_v42, %v4330_v10  ;;  %v2685_v51 = vcombine.low %v1338_v41, %v1342_v43  ;;  %v1514_v52 = vrot.slane %v636_v35, %v4306_v0  ;;  %v1518_v53 = vrot.slane %v636_v35, %v4309_v2 }
 0x226   : > { %v1946_v54 = vrot.slane %v1932_v46, %v4330_v10  ;;  %v2686_v24 = vcombine.low %v1346_v44, %v1350_v47  ;;  %v2693_v55 = vrot.slane %v2683_v48, %v4330_v10  ;;  %v2700_v57 = vrot.slane %v2684_v49, %v4330_v10 }
 0x227   : > { %v2707_v37 = vrot.slane %v2685_v51, %v4330_v10  ;;  %v1522_v59 = vrot.slane %v636_v35, %v4312_v3  ;;  %v1526_v61 = vrot.slane %v636_v35, %v4315_v1  ;;  %v1530_v62 = vrot.slane %v636_v35, %v4318_v4 }
 0x228   : > { %v1947_v12 = vcombine.low %v1939_v50, %v1946_v54  ;;  %v2714_v13 = vrot.slane %v2686_v24, %v4330_v10  ;;  %v2715_v14 = vcombine.low %v2693_v55, %v2700_v57  ;;  %v1534_v15 = vrot.slane %v636_v35, %v4321_v5 }
 0x229   : > { %v1538_v16 = vrot.slane %v636_v35, %v4324_v6  ;;  %v1542_v8 = vrot.slane %v636_v35, %v4327_v7  ;;  %v2977_v17 = vcombine.low %v1514_v52, %v1518_v53  ;;  %v2978_v9 = vcombine.low %v1522_v59, %v1526_v61 }
 0x22a   : > { %3284 = vperm.xlu1 %3851, %v1947_v12   ;;  %v2716_v18 = vcombine.low %v2707_v37, %v2714_v13  ;;  %v2723_v19 = vrot.slane %v2715_v14, %v4330_v10  ;;  %v2979_v20 = vcombine.low %v1530_v62, %v1534_v15  ;;  %v906_v21 = vrot.slane %v4418_v33, %v4306_v0 }
 0x22b   : > { %v2980_v22 = vcombine.low %v1538_v16, %v1542_v8  ;;  %v2987_v23 = vrot.slane %v2977_v17, %v4330_v10  ;;  %v2994_v25 = vrot.slane %v2978_v9, %v4330_v10  ;;  %v910_v26 = vrot.slane %v4418_v33, %v4309_v2 }
 0x22c   : > { %v2730_v27 = vrot.slane %v2716_v18, %v4330_v10  ;;  %v3001_v28 = vrot.slane %v2979_v20, %v4330_v10  ;;  %v914_v29 = vrot.slane %v4418_v33, %v4312_v3  ;;  %v918_v30 = vrot.slane %v4418_v33, %v4315_v1 }
 0x22d   : > { %v3008_v32 = vrot.slane %v2980_v22, %v4330_v10  ;;  %v3009_v56 = vcombine.low %v2987_v23, %v2994_v25  ;;  %v922_v34 = vrot.slane %v4418_v33, %v4318_v4  ;;  %v926_v35 = vrot.slane %v4418_v33, %v4321_v5 }
 0x22e   : > { %v2731_v38 = vcombine.low %v2723_v19, %v2730_v27  ;;  %v930_v39 = vrot.slane %v4418_v33, %v4324_v6  ;;  %v934_v40 = vrot.slane %v4418_v33, %v4327_v7  ;;  %v2046_v41 = vcombine.low %v906_v21, %v910_v26  ;;  %v602_v21 = vpop.xlane.xlu1 %601 }
 0x22f   : > { %v3010_v36 = vcombine.low %v3001_v28, %v3008_v32  ;;  %v3017_v42 = vrot.slane %v3009_v56, %v4330_v10  ;;  %v2047_v43 = vcombine.low %v914_v29, %v918_v30  ;;  %v2048_v44 = vcombine.low %v922_v34, %v926_v35 }
 0x230   : > { %3332 = vperm.xlu1 %3851, %v2731_v38   ;;  %v2049_v46 = vcombine.low %v930_v39, %v934_v40  ;;  %v2056_v47 = vrot.slane %v2046_v41, %v4330_v10  ;;  %v1546_v48 = vrot.slane %v638_v31, %v4306_v0  ;;  %v1550_v49 = vrot.slane %v638_v31, %v4309_v2 }
 0x231   : > { %v3024_v50 = vrot.slane %v3010_v36, %v4330_v10  ;;  %v2063_v51 = vrot.slane %v2047_v43, %v4330_v10  ;;  %v2070_v33 = vrot.slane %v2048_v44, %v4330_v10  ;;  %v1554_v52 = vrot.slane %v638_v31, %v4312_v3 }
 0x232   : > { %v2077_v53 = vrot.slane %v2049_v46, %v4330_v10  ;;  %v1558_v54 = vrot.slane %v638_v31, %v4315_v1  ;;  %v1562_v24 = vrot.slane %v638_v31, %v4318_v4  ;;  %v1566_v55 = vrot.slane %v638_v31, %v4321_v5 }
 0x233   : > { %v3025_v57 = vcombine.low %v3017_v42, %v3024_v50  ;;  %v2078_v37 = vcombine.low %v2056_v47, %v2063_v51  ;;  %v1570_v59 = vrot.slane %v638_v31, %v4324_v6  ;;  %v1574_v61 = vrot.slane %v638_v31, %v4327_v7  ;;  %v4628_v31 = vpop.xlane.xlu0 %599 }
 0x234   : > { %v2079_v62 = vcombine.low %v2070_v33, %v2077_v53  ;;  %v3026_v12 = vcombine.low %v1546_v48, %v1550_v49  ;;  %v3027_v13 = vcombine.low %v1554_v52, %v1558_v54  ;;  %v3028_v14 = vcombine.low %v1562_v24, %v1566_v55 }
 0x235   : > { %3350 = vperm.xlu0 %3852, %v3025_v57   ;;  %v2086_v15 = vrot.slane %v2078_v37, %v4330_v10  ;;  %v3029_v16 = vcombine.low %v1570_v59, %v1574_v61  ;;  %v842_v8 = vrot.slane %v4465_v45, %v4306_v0  ;;  %v846_v17 = vrot.slane %v4465_v45, %v4309_v2 }
 0x236   : > { %v2093_v9 = vrot.slane %v2079_v62, %v4330_v10  ;;  %v3036_v18 = vrot.slane %v3026_v12, %v4330_v10  ;;  %v3043_v19 = vrot.slane %v3027_v13, %v4330_v10  ;;  %v3050_v20 = vrot.slane %v3028_v14, %v4330_v10 }
 0x237   : > { %v3057_v22 = vrot.slane %v3029_v16, %v4330_v10  ;;  %v850_v23 = vrot.slane %v4465_v45, %v4312_v3  ;;  %v854_v25 = vrot.slane %v4465_v45, %v4315_v1  ;;  %v858_v26 = vrot.slane %v4465_v45, %v4318_v4  ;;  %v4646_v55 = vpop.xlane.xlu0 %631 }
 0x238   : > { %v2094_v27 = vcombine.low %v2086_v15, %v2093_v9  ;;  %v3058_v28 = vcombine.low %v3036_v18, %v3043_v19  ;;  %v862_v29 = vrot.slane %v4465_v45, %v4321_v5  ;;  %v866_v30 = vrot.slane %v4465_v45, %v4324_v6  ;;  %v634_v9 = vpop.xlane.xlu1 %633 }
 0x239   : > { %v3059_v32 = vcombine.low %v3050_v20, %v3057_v22  ;;  %v870_v56 = vrot.slane %v4465_v45, %v4327_v7  ;;  %v1948_v34 = vcombine.low %v842_v8, %v846_v17  ;;  %v1949_v35 = vcombine.low %v850_v23, %v854_v25 }
 0x23a   : > { %3293 = vperm.xlu1 %3851, %v2094_v27   ;;  %v3066_v38 = vrot.slane %v3058_v28, %v4330_v10  ;;  %v1950_v39 = vcombine.low %v858_v26, %v862_v29  ;;  %v970_v40 = vrot.slane %v602_v21, %v4306_v0  ;;  %v974_v41 = vrot.slane %v602_v21, %v4309_v2 }
 0x23b   : > { %v3073_v36 = vrot.slane %v3059_v32, %v4330_v10  ;;  %v1951_v42 = vcombine.low %v866_v30, %v870_v56  ;;  %v1958_v43 = vrot.slane %v1948_v34, %v4330_v10  ;;  %v1965_v44 = vrot.slane %v1949_v35, %v4330_v10  ;;  %v4671_v32 = vpop.xlane.xlu0 %611 }
 0x23c   : > { %v1972_v46 = vrot.slane %v1950_v39, %v4330_v10  ;;  %v978_v45 = vrot.slane %v602_v21, %v4312_v3  ;;  %v982_v47 = vrot.slane %v602_v21, %v4315_v1  ;;  %v986_v48 = vrot.slane %v602_v21, %v4318_v4 }
 0x23d   : > { %v3074_v49 = vcombine.low %v3066_v38, %v3073_v36  ;;  %v1979_v50 = vrot.slane %v1951_v42, %v4330_v10  ;;  %v1980_v51 = vcombine.low %v1958_v43, %v1965_v44  ;;  %v990_v33 = vrot.slane %v602_v21, %v4321_v5 }
 0x23e   : > { %v994_v52 = vrot.slane %v602_v21, %v4324_v6  ;;  %v998_v53 = vrot.slane %v602_v21, %v4327_v7  ;;  %v2144_v54 = vcombine.low %v970_v40, %v974_v41  ;;  %v2145_v24 = vcombine.low %v978_v45, %v982_v47 }
 0x23f   : > { %3353 = vperm.xlu0 %3852, %v3074_v49   ;;  %v1981_v57 = vcombine.low %v1972_v46, %v1979_v50  ;;  %v1988_v37 = vrot.slane %v1980_v51, %v4330_v10  ;;  %v2146_v59 = vcombine.low %v986_v48, %v990_v33  ;;  %v1002_v61 = vrot.slane %v4516_v11, %v4306_v0 }
 0x240   : > { %v2147_v62 = vcombine.low %v994_v52, %v998_v53  ;;  %v2154_v12 = vrot.slane %v2144_v54, %v4330_v10  ;;  %v2161_v13 = vrot.slane %v2145_v24, %v4330_v10  ;;  %v1006_v14 = vrot.slane %v4516_v11, %v4309_v2 }
 0x241   : > { %v1995_v15 = vrot.slane %v1981_v57, %v4330_v10  ;;  %v2168_v16 = vrot.slane %v2146_v59, %v4330_v10  ;;  %v1010_v8 = vrot.slane %v4516_v11, %v4312_v3  ;;  %v1014_v17 = vrot.slane %v4516_v11, %v4315_v1  ;;  %v4691_v57 = vpop.xlane.xlu0 %607 }
 0x242   : > { %v2175_v18 = vrot.slane %v2147_v62, %v4330_v10  ;;  %v2176_v19 = vcombine.low %v2154_v12, %v2161_v13  ;;  %v1018_v20 = vrot.slane %v4516_v11, %v4318_v4  ;;  %v1022_v21 = vrot.slane %v4516_v11, %v4321_v5 }
 0x243   : > { %v1996_v22 = vcombine.low %v1988_v37, %v1995_v15  ;;  %v1026_v23 = vrot.slane %v4516_v11, %v4324_v6  ;;  %v1030_v25 = vrot.slane %v4516_v11, %v4327_v7  ;;  %v2193_v26 = vcombine.low %v1002_v61, %v1006_v14 }
 0x244   : > { %v2177_v27 = vcombine.low %v2168_v16, %v2175_v18  ;;  %v2184_v28 = vrot.slane %v2176_v19, %v4330_v10  ;;  %v2194_v29 = vcombine.low %v1010_v8, %v1014_v17  ;;  %v2195_v30 = vcombine.low %v1018_v20, %v1022_v21 }
 0x245   : > { %3287 = vperm.xlu1 %3851, %v1996_v22   ;;  %v2196_v56 = vcombine.low %v1026_v23, %v1030_v25  ;;  %v2203_v34 = vrot.slane %v2193_v26, %v4330_v10  ;;  %v1482_v35 = vrot.slane %v634_v9, %v4306_v0  ;;  %v1486_v38 = vrot.slane %v634_v9, %v4309_v2 }
 0x246   : > { %v2191_v39 = vrot.slane %v2177_v27, %v4330_v10  ;;  %v2210_v11 = vrot.slane %v2194_v29, %v4330_v10  ;;  %v2217_v40 = vrot.slane %v2195_v30, %v4330_v10  ;;  %v1490_v41 = vrot.slane %v634_v9, %v4312_v3 }
 0x247   : > { %v2224_v36 = vrot.slane %v2196_v56, %v4330_v10  ;;  %v1494_v42 = vrot.slane %v634_v9, %v4315_v1  ;;  %v1498_v43 = vrot.slane %v634_v9, %v4318_v4  ;;  %v1502_v44 = vrot.slane %v634_v9, %v4321_v5 }
 0x248   : > { %v2192_v46 = vcombine.low %v2184_v28, %v2191_v39  ;;  %v2225_v45 = vcombine.low %v2203_v34, %v2210_v11  ;;  %v1506_v47 = vrot.slane %v634_v9, %v4324_v6  ;;  %v1510_v48 = vrot.slane %v634_v9, %v4327_v7 }
 0x249   : > { %v2226_v49 = vcombine.low %v2217_v40, %v2224_v36  ;;  %v2928_v50 = vcombine.low %v1482_v35, %v1486_v38  ;;  %v2929_v51 = vcombine.low %v1490_v41, %v1494_v42  ;;  %v2930_v33 = vcombine.low %v1498_v43, %v1502_v44 }
 0x24a   : > { %3299 = vperm.xlu0 %3852, %v2192_v46   ;;  %v2233_v52 = vrot.slane %v2225_v45, %v4330_v10  ;;  %v2931_v53 = vcombine.low %v1506_v47, %v1510_v48  ;;  %v938_v54 = vrot.slane %v4628_v31, %v4306_v0  ;;  %v942_v24 = vrot.slane %v4628_v31, %v4309_v2 }
 0x24b   : > { %v2240_v37 = vrot.slane %v2226_v49, %v4330_v10  ;;  %v2938_v59 = vrot.slane %v2928_v50, %v4330_v10  ;;  %v2945_v61 = vrot.slane %v2929_v51, %v4330_v10  ;;  %v2952_v62 = vrot.slane %v2930_v33, %v4330_v10 }
 0x24c   : > { %v2959_v12 = vrot.slane %v2931_v53, %v4330_v10  ;;  %v946_v13 = vrot.slane %v4628_v31, %v4312_v3  ;;  %v950_v14 = vrot.slane %v4628_v31, %v4315_v1  ;;  %v954_v15 = vrot.slane %v4628_v31, %v4318_v4 }
 0x24d   : > { %v2241_v16 = vcombine.low %v2233_v52, %v2240_v37  ;;  %v2960_v8 = vcombine.low %v2938_v59, %v2945_v61  ;;  %v958_v17 = vrot.slane %v4628_v31, %v4321_v5  ;;  %v962_v9 = vrot.slane %v4628_v31, %v4324_v6 }
 0x24e   : > { %v2961_v18 = vcombine.low %v2952_v62, %v2959_v12  ;;  %v966_v19 = vrot.slane %v4628_v31, %v4327_v7  ;;  %v2095_v20 = vcombine.low %v938_v54, %v942_v24  ;;  %v2096_v21 = vcombine.low %v946_v13, %v950_v14  ;;  %v4718_v31 = vpop.xlane.xlu0 %639 }
 0x24f   : > { %3302 = vperm.xlu1 %3851, %v2241_v16   ;;  %v2968_v22 = vrot.slane %v2960_v8, %v4330_v10  ;;  %v2097_v23 = vcombine.low %v954_v15, %v958_v17  ;;  %v1450_v25 = vrot.slane %v4646_v55, %v4306_v0  ;;  %v1454_v26 = vrot.slane %v4646_v55, %v4309_v2 }
 0x250   : > { %v2975_v27 = vrot.slane %v2961_v18, %v4330_v10  ;;  %v2098_v28 = vcombine.low %v962_v9, %v966_v19  ;;  %v2105_v29 = vrot.slane %v2095_v20, %v4330_v10  ;;  %v2112_v30 = vrot.slane %v2096_v21, %v4330_v10 }
 0x251   : > { %v2119_v56 = vrot.slane %v2097_v23, %v4330_v10  ;;  %v1458_v34 = vrot.slane %v4646_v55, %v4312_v3  ;;  %v1462_v35 = vrot.slane %v4646_v55, %v4315_v1  ;;  %v1466_v38 = vrot.slane %v4646_v55, %v4318_v4 }
 0x252   : > { %v2976_v39 = vcombine.low %v2968_v22, %v2975_v27  ;;  %v2126_v11 = vrot.slane %v2098_v28, %v4330_v10  ;;  %v2127_v40 = vcombine.low %v2105_v29, %v2112_v30  ;;  %v1470_v41 = vrot.slane %v4646_v55, %v4321_v5  ;;  %v644_v24 = vpop.xlane.xlu0 %643 }
 0x253   : > { %v1474_v36 = vrot.slane %v4646_v55, %v4324_v6  ;;  %v1478_v42 = vrot.slane %v4646_v55, %v4327_v7  ;;  %v2879_v43 = vcombine.low %v1450_v25, %v1454_v26  ;;  %v2880_v44 = vcombine.low %v1458_v34, %v1462_v35 }
 0x254   : > { %3347 = vperm.xlu0 %3852, %v2976_v39   ;;  %v2128_v46 = vcombine.low %v2119_v56, %v2126_v11  ;;  %v2135_v45 = vrot.slane %v2127_v40, %v4330_v10  ;;  %v2881_v47 = vcombine.low %v1466_v38, %v1470_v41  ;;  %v1034_v48 = vrot.slane %v4562_v58, %v4306_v0  ;;  %v4770_v41 = vpop.xlane.xlu1 %613 }
 0x255   : > { %v2882_v49 = vcombine.low %v1474_v36, %v1478_v42  ;;  %v2889_v50 = vrot.slane %v2879_v43, %v4330_v10  ;;  %v2896_v51 = vrot.slane %v2880_v44, %v4330_v10  ;;  %v1038_v33 = vrot.slane %v4562_v58, %v4309_v2 }
 0x256   : > { %v2142_v55 = vrot.slane %v2128_v46, %v4330_v10  ;;  %v2903_v52 = vrot.slane %v2881_v47, %v4330_v10  ;;  %v1042_v53 = vrot.slane %v4562_v58, %v4312_v3  ;;  %v1046_v54 = vrot.slane %v4562_v58, %v4315_v1 }
 0x257   : > { %v2910_v37 = vrot.slane %v2882_v49, %v4330_v10  ;;  %v2911_v59 = vcombine.low %v2889_v50, %v2896_v51  ;;  %v1050_v61 = vrot.slane %v4562_v58, %v4318_v4  ;;  %v1054_v62 = vrot.slane %v4562_v58, %v4321_v5 }
 0x258   : > { %v2143_v12 = vcombine.low %v2135_v45, %v2142_v55  ;;  %v1058_v13 = vrot.slane %v4562_v58, %v4324_v6  ;;  %v1062_v14 = vrot.slane %v4562_v58, %v4327_v7  ;;  %v2242_v15 = vcombine.low %v1034_v48, %v1038_v33 }
 0x259   : > { %v2912_v16 = vcombine.low %v2903_v52, %v2910_v37  ;;  %v2919_v8 = vrot.slane %v2911_v59, %v4330_v10  ;;  %v2243_v17 = vcombine.low %v1042_v53, %v1046_v54  ;;  %v2244_v9 = vcombine.low %v1050_v61, %v1054_v62 }
 0x25a   : > { %3296 = vperm.xlu1 %3851, %v2143_v12   ;;  %v2245_v18 = vcombine.low %v1058_v13, %v1062_v14  ;;  %v2252_v19 = vrot.slane %v2242_v15, %v4330_v10  ;;  %v1642_v20 = vrot.slane %v644_v24, %v4306_v0  ;;  %v1646_v21 = vrot.slane %v644_v24, %v4309_v2  ;;  %v4799_v15 = vpop.xlane.xlu1 %645 }
 0x25b   : > { %v2926_v22 = vrot.slane %v2912_v16, %v4330_v10  ;;  %v2259_v23 = vrot.slane %v2243_v17, %v4330_v10  ;;  %v2266_v58 = vrot.slane %v2244_v9, %v4330_v10  ;;  %v1650_v25 = vrot.slane %v644_v24, %v4312_v3 }
 0x25c   : > { %v2273_v26 = vrot.slane %v2245_v18, %v4330_v10  ;;  %v1654_v27 = vrot.slane %v644_v24, %v4315_v1  ;;  %v1658_v28 = vrot.slane %v644_v24, %v4318_v4  ;;  %v1662_v29 = vrot.slane %v644_v24, %v4321_v5 }
 0x25d   : > { %v2927_v30 = vcombine.low %v2919_v8, %v2926_v22  ;;  %v2274_v56 = vcombine.low %v2252_v19, %v2259_v23  ;;  %v1666_v34 = vrot.slane %v644_v24, %v4324_v6  ;;  %v1670_v35 = vrot.slane %v644_v24, %v4327_v7 }
 0x25e   : > { %v2275_v38 = vcombine.low %v2266_v58, %v2273_v26  ;;  %v3173_v39 = vcombine.low %v1642_v20, %v1646_v21  ;;  %v3174_v11 = vcombine.low %v1650_v25, %v1654_v27  ;;  %v3175_v40 = vcombine.low %v1658_v28, %v1662_v29 }
 0x25f   : > { %3344 = vperm.xlu1 %3851, %v2927_v30   ;;  %v2282_v36 = vrot.slane %v2274_v56, %v4330_v10  ;;  %v3176_v42 = vcombine.low %v1666_v34, %v1670_v35  ;;  %v1130_v43 = vrot.slane %v4671_v32, %v4306_v0  ;;  %v1134_v44 = vrot.slane %v4671_v32, %v4309_v2 }
 0x260   : > { %v2289_v46 = vrot.slane %v2275_v38, %v4330_v10  ;;  %v3183_v45 = vrot.slane %v3173_v39, %v4330_v10  ;;  %v3190_v47 = vrot.slane %v3174_v11, %v4330_v10  ;;  %v3197_v48 = vrot.slane %v3175_v40, %v4330_v10  ;;  %v610_v40 = vpop.xlane.xlu1 %609 }
 0x261   : > { %v3204_v49 = vrot.slane %v3176_v42, %v4330_v10  ;;  %v1138_v50 = vrot.slane %v4671_v32, %v4312_v3  ;;  %v1142_v51 = vrot.slane %v4671_v32, %v4315_v1  ;;  %v1146_v33 = vrot.slane %v4671_v32, %v4318_v4 }
 0x262   : > { %v2290_v55 = vcombine.low %v2282_v36, %v2289_v46  ;;  %v3205_v52 = vcombine.low %v3183_v45, %v3190_v47  ;;  %v1150_v53 = vrot.slane %v4671_v32, %v4321_v5  ;;  %v1154_v54 = vrot.slane %v4671_v32, %v4324_v6 }
 0x263   : > { %v3206_v24 = vcombine.low %v3197_v48, %v3204_v49  ;;  %v1158_v37 = vrot.slane %v4671_v32, %v4327_v7  ;;  %v2389_v59 = vcombine.low %v1130_v43, %v1134_v44  ;;  %v2390_v61 = vcombine.low %v1138_v50, %v1142_v51 }
 0x264   : > { %3305 = vperm.xlu1 %3851, %v2290_v55   ;;  %v3213_v62 = vrot.slane %v3205_v52, %v4330_v10  ;;  %v2391_v12 = vcombine.low %v1146_v33, %v1150_v53  ;;  %v1578_v13 = vrot.slane %v4718_v31, %v4306_v0  ;;  %v1582_v14 = vrot.slane %v4718_v31, %v4309_v2 }
 0x265   : > { %v3220_v16 = vrot.slane %v3206_v24, %v4330_v10  ;;  %v2392_v8 = vcombine.low %v1154_v54, %v1158_v37  ;;  %v2399_v17 = vrot.slane %v2389_v59, %v4330_v10  ;;  %v2406_v32 = vrot.slane %v2390_v61, %v4330_v10 }
 0x266   : > { %v2413_v9 = vrot.slane %v2391_v12, %v4330_v10  ;;  %v1586_v18 = vrot.slane %v4718_v31, %v4312_v3  ;;  %v1590_v19 = vrot.slane %v4718_v31, %v4315_v1  ;;  %v1594_v20 = vrot.slane %v4718_v31, %v4318_v4 }
 0x267   : > { %v3221_v21 = vcombine.low %v3213_v62, %v3220_v16  ;;  %v2420_v22 = vrot.slane %v2392_v8, %v4330_v10  ;;  %v2421_v23 = vcombine.low %v2399_v17, %v2406_v32  ;;  %v1598_v58 = vrot.slane %v4718_v31, %v4321_v5 }
 0x268   : > { %v1602_v25 = vrot.slane %v4718_v31, %v4324_v6  ;;  %v1606_v26 = vrot.slane %v4718_v31, %v4327_v7  ;;  %v3075_v27 = vcombine.low %v1578_v13, %v1582_v14  ;;  %v3076_v28 = vcombine.low %v1586_v18, %v1590_v19  ;;  %v642_v13 = vpop.xlane.xlu1 %641 }
 0x269   : > { %3362 = vperm.xlu0 %3852, %v3221_v21   ;;  %v2422_v29 = vcombine.low %v2413_v9, %v2420_v22  ;;  %v2429_v30 = vrot.slane %v2421_v23, %v4330_v10  ;;  %v3077_v56 = vcombine.low %v1594_v20, %v1598_v58  ;;  %v1066_v34 = vrot.slane %v4691_v57, %v4306_v0 }
 0x26a   : > { %v3078_v35 = vcombine.low %v1602_v25, %v1606_v26  ;;  %v3085_v38 = vrot.slane %v3075_v27, %v4330_v10  ;;  %v3092_v39 = vrot.slane %v3076_v28, %v4330_v10  ;;  %v1070_v11 = vrot.slane %v4691_v57, %v4309_v2 }
 0x26b   : > { %v2436_v31 = vrot.slane %v2422_v29, %v4330_v10  ;;  %v3099_v36 = vrot.slane %v3077_v56, %v4330_v10  ;;  %v1074_v42 = vrot.slane %v4691_v57, %v4312_v3  ;;  %v1078_v43 = vrot.slane %v4691_v57, %v4315_v1 }
 0x26c   : > { %v3106_v44 = vrot.slane %v3078_v35, %v4330_v10  ;;  %v3107_v46 = vcombine.low %v3085_v38, %v3092_v39  ;;  %v1082_v45 = vrot.slane %v4691_v57, %v4318_v4  ;;  %v1086_v47 = vrot.slane %v4691_v57, %v4321_v5 }
 0x26d   : > { %v2437_v48 = vcombine.low %v2429_v30, %v2436_v31  ;;  %v1090_v49 = vrot.slane %v4691_v57, %v4324_v6  ;;  %v1094_v50 = vrot.slane %v4691_v57, %v4327_v7  ;;  %v2291_v51 = vcombine.low %v1066_v34, %v1070_v11 }
 0x26e   : > { %v3108_v33 = vcombine.low %v3099_v36, %v3106_v44  ;;  %v3115_v55 = vrot.slane %v3107_v46, %v4330_v10  ;;  %v2292_v52 = vcombine.low %v1074_v42, %v1078_v43  ;;  %v2293_v53 = vcombine.low %v1082_v45, %v1086_v47 }
 0x26f   : > { %3314 = vperm.xlu1 %3851, %v2437_v48   ;;  %v2294_v54 = vcombine.low %v1090_v49, %v1094_v50  ;;  %v2301_v24 = vrot.slane %v2291_v51, %v4330_v10  ;;  %v1098_v37 = vrot.slane %v610_v40, %v4306_v0  ;;  %v1102_v59 = vrot.slane %v610_v40, %v4309_v2 }
 0x270   : > { %v3122_v61 = vrot.slane %v3108_v33, %v4330_v10  ;;  %v2308_v62 = vrot.slane %v2292_v52, %v4330_v10  ;;  %v2315_v57 = vrot.slane %v2293_v53, %v4330_v10  ;;  %v1106_v12 = vrot.slane %v610_v40, %v4312_v3 }
 0x271   : > { %v2322_v14 = vrot.slane %v2294_v54, %v4330_v10  ;;  %v1110_v16 = vrot.slane %v610_v40, %v4315_v1  ;;  %v1114_v8 = vrot.slane %v610_v40, %v4318_v4  ;;  %v1118_v17 = vrot.slane %v610_v40, %v4321_v5 }
 0x272   : > { %v3123_v32 = vcombine.low %v3115_v55, %v3122_v61  ;;  %v2323_v9 = vcombine.low %v2301_v24, %v2308_v62  ;;  %v1122_v18 = vrot.slane %v610_v40, %v4324_v6  ;;  %v1126_v19 = vrot.slane %v610_v40, %v4327_v7 }
 0x273   : > { %v2324_v20 = vcombine.low %v2315_v57, %v2322_v14  ;;  %v2340_v21 = vcombine.low %v1098_v37, %v1102_v59  ;;  %v2341_v22 = vcombine.low %v1106_v12, %v1110_v16  ;;  %v2342_v23 = vcombine.low %v1114_v8, %v1118_v17 }
 0x274   : > { %3356 = vperm.xlu0 %3852, %v3123_v32   ;;  %v2331_v58 = vrot.slane %v2323_v9, %v4330_v10  ;;  %v2343_v25 = vcombine.low %v1122_v18, %v1126_v19  ;;  %v1610_v26 = vrot.slane %v642_v13, %v4306_v0  ;;  %v1614_v27 = vrot.slane %v642_v13, %v4309_v2 }
 0x275   : > { %v2338_v28 = vrot.slane %v2324_v20, %v4330_v10  ;;  %v2350_v29 = vrot.slane %v2340_v21, %v4330_v10  ;;  %v2357_v30 = vrot.slane %v2341_v22, %v4330_v10  ;;  %v2364_v56 = vrot.slane %v2342_v23, %v4330_v10 }
 0x276   : > { %v2371_v34 = vrot.slane %v2343_v25, %v4330_v10  ;;  %v1618_v35 = vrot.slane %v642_v13, %v4312_v3  ;;  %v1622_v38 = vrot.slane %v642_v13, %v4315_v1  ;;  %v1626_v39 = vrot.slane %v642_v13, %v4318_v4 }
 0x277   : > { %v2339_v11 = vcombine.low %v2331_v58, %v2338_v28  ;;  %v2372_v40 = vcombine.low %v2350_v29, %v2357_v30  ;;  %v1630_v31 = vrot.slane %v642_v13, %v4321_v5  ;;  %v1634_v36 = vrot.slane %v642_v13, %v4324_v6 }
 0x278   : > { %v2373_v42 = vcombine.low %v2364_v56, %v2371_v34  ;;  %v1638_v43 = vrot.slane %v642_v13, %v4327_v7  ;;  %v3124_v44 = vcombine.low %v1610_v26, %v1614_v27  ;;  %v3125_v46 = vcombine.low %v1618_v35, %v1622_v38 }
 0x279   : > { %3308 = vperm.xlu1 %3851, %v2339_v11   ;;  %v2380_v45 = vrot.slane %v2372_v40, %v4330_v10  ;;  %v3126_v47 = vcombine.low %v1626_v39, %v1630_v31  ;;  %v1162_v48 = vrot.slane %v4770_v41, %v4306_v0  ;;  %v1166_v49 = vrot.slane %v4770_v41, %v4309_v2 }
 0x27a   : > { %v2387_v50 = vrot.slane %v2373_v42, %v4330_v10  ;;  %v3127_v51 = vcombine.low %v1634_v36, %v1638_v43  ;;  %v3134_v33 = vrot.slane %v3124_v44, %v4330_v10  ;;  %v3141_v55 = vrot.slane %v3125_v46, %v4330_v10  ;;  %v3279_v36 = vpop.permute.xlu1 %3278 }
 0x27b   : > { %v3148_v52 = vrot.slane %v3126_v47, %v4330_v10  ;;  %v1170_v53 = vrot.slane %v4770_v41, %v4312_v3  ;;  %v1174_v54 = vrot.slane %v4770_v41, %v4315_v1  ;;  %v1178_v24 = vrot.slane %v4770_v41, %v4318_v4 }
 0x27c   : > { %v2388_v37 = vcombine.low %v2380_v45, %v2387_v50  ;;  %v3155_v59 = vrot.slane %v3127_v51, %v4330_v10  ;;  %v3156_v61 = vcombine.low %v3134_v33, %v3141_v55  ;;  %v1182_v62 = vrot.slane %v4770_v41, %v4321_v5 }
 0x27d   : > { %v1186_v57 = vrot.slane %v4770_v41, %v4324_v6  ;;  %v1190_v12 = vrot.slane %v4770_v41, %v4327_v7  ;;  %v2438_v13 = vcombine.low %v1162_v48, %v1166_v49  ;;  %v2439_v14 = vcombine.low %v1170_v53, %v1174_v54  ;;  %v3273_v49 = vpop.permute.xlu0 %3272 }
 0x27e   : > { %3311 = vperm.xlu1 %3851, %v2388_v37   ;;  %v3157_v16 = vcombine.low %v3148_v52, %v3155_v59  ;;  %v3164_v8 = vrot.slane %v3156_v61, %v4330_v10  ;;  %v2440_v17 = vcombine.low %v1178_v24, %v1182_v62  ;;  %v1674_v32 = vrot.slane %v4799_v15, %v4306_v0  ;;  %v3327_v42 = vpop.permute.xlu1 %3326 }
 0x27f   : > { %v2441_v9 = vcombine.low %v1186_v57, %v1190_v12  ;;  %v2448_v18 = vrot.slane %v2438_v13, %v4330_v10  ;;  %v2455_v19 = vrot.slane %v2439_v14, %v4330_v10  ;;  %v1678_v20 = vrot.slane %v4799_v15, %v4309_v2 }
 0x280   : > { %v3171_v41 = vrot.slane %v3157_v16, %v4330_v10  ;;  %v2462_v21 = vrot.slane %v2440_v17, %v4330_v10  ;;  %v1682_v22 = vrot.slane %v4799_v15, %v4312_v3  ;;  %v1686_v23 = vrot.slane %v4799_v15, %v4315_v1 }
 0x281   : > { %v2469_v0 = vrot.slane %v2441_v9, %v4330_v10  ;;  %v2470_v58 = vcombine.low %v2448_v18, %v2455_v19  ;;  %v1690_v25 = vrot.slane %v4799_v15, %v4318_v4  ;;  %v1694_v26 = vrot.slane %v4799_v15, %v4321_v5  ;;  %v3330_v51 = vpop.permute.xlu0 %3329 }
 0x282   : > { %v3172_v2 = vcombine.low %v3164_v8, %v3171_v41  ;;  %v1698_v27 = vrot.slane %v4799_v15, %v4324_v6  ;;  %v1702_v28 = vrot.slane %v4799_v15, %v4327_v7  ;;  %v3222_v3 = vcombine.low %v1674_v32, %v1678_v20  ;;  %v3321_v43 = vpop.permute.xlu1 %3320 }
 0x283   : > { %v2471_v29 = vcombine.low %v2462_v21, %v2469_v0  ;;  %v2478_v1 = vrot.slane %v2470_v58, %v4330_v10  ;;  %v3223_v30 = vcombine.low %v1682_v22, %v1686_v23  ;;  %v3224_v56 = vcombine.low %v1690_v25, %v1694_v26 }
 0x284   : > { %3359 = vperm.xlu0 %3852, %v3172_v2   ;;  %v3225_v34 = vcombine.low %v1698_v27, %v1702_v28  ;;  %v3232_v4 = vrot.slane %v3222_v3, %v4330_v10  ;;  %v4933_v37 = vand.u32 127, %v679_v60 }
 0x285   : > { %v2485_v35 = vrot.slane %v2471_v29, %v4330_v10  ;;  %v3239_v5 = vrot.slane %v3223_v30, %v4330_v10  ;;  %v3246_v38 = vrot.slane %v3224_v56, %v4330_v10  ;;  %v3324_v55 = vpop.permute.xlu0 %3323 }
 0x286   : > { %v3253_v6 = vrot.slane %v3225_v34, %v4330_v10  ;;  %v3373_v61 = vadd.s32 4294967288, %v4933_v37  ;;  %v3380_v13 = vadd.s32 4294967280, %v4933_v37  ;;  %v3371_v16 = vsub.s32 %v4933_v37, %v4303_v63 }
 0x287   : > { %v2486_v39 = vcombine.low %v2478_v1, %v2485_v35  ;;  %v3254_v7 = vcombine.low %v3232_v4, %v3239_v5  ;;  %v3387_v8 = vadd.s32 4294967272, %v4933_v37  ;;  %v3394_v32 = vadd.s32 4294967264, %v4933_v37 }
 0x288   : > { %v3255_v15 = vcombine.low %v3246_v38, %v3253_v6  ;;  %v3376_v57 = vsub.s32 %v3373_v61, %v4303_v63  ;;  %v3383_v9 = vsub.s32 %v3380_v13, %v4303_v63  ;;  %v3481_v18 = vrot.slane %v3321_v43, %v3371_v16 }
 0x289   : > { %3317 = vperm.xlu1 %3851, %v2486_v39   ;;  %v3262_v11 = vrot.slane %v3254_v7, %v4330_v10  ;;  %v3372_v41 = vrot.slane %v3273_v49, %v3371_v16  ;;  %v3390_v21 = vsub.s32 %v3387_v8, %v4303_v63  ;;  %v3401_v23 = vadd.s32 4294967256, %v4933_v37 }
 0x28a   : > { %v3269_v40 = vrot.slane %v3255_v15, %v4330_v10  ;;  %v4920_v44 = vpop.permute.xlu1 %3281  ;;  %v3485_v17 = vrot.slane %v3324_v55, %v3376_v57  ;;  %v3490_v58 = vrot.slane %v3327_v42, %v3383_v9  ;;  %v3397_v25 = vsub.s32 %v3394_v32, %v4303_v63 }
 0x28b   : > { %v3384_v26 = vrot.slane %v3279_v36, %v3383_v9  ;;  %v3408_v28 = vadd.s32 4294967248, %v4933_v37  ;;  %v3495_v29 = vrot.slane %v3330_v51, %v3390_v21  ;;  %v3404_v1 = vsub.s32 %v3401_v23, %v4303_v63 }
 0x28c   : > { %v3270_v31 = vcombine.low %v3262_v11, %v3269_v40  ;;  %v3486_v22 = vsel %vm3378_vm0, %v3485_v17, %v3481_v18  ;;  %v3415_v56 = vadd.s32 4294967240, %v4933_v37  ;;  %v3422_v35 = vadd.s32 4294967232, %v4933_v37 }
 0x28d   : > { %v3491_v27 = vsel %vm3385_vm1, %v3490_v58, %v3486_v22  ;;  %v3391_v5 = vrot.slane %v4920_v44, %v3390_v21  ;;  %v3411_v7 = vsub.s32 %v3408_v28, %v4303_v63  ;;  %v3436_v51 = vadd.s32 4294967216, %v4933_v37 }
 0x28e   : > { %3365 = vperm.xlu0 %3852, %v3270_v31   ;;  %v3496_v38 = vsel %vm3392_vm2, %v3495_v29, %v3491_v27  ;;  %v3429_v31 = vadd.s32 4294967224, %v4933_v37  ;;  %v3425_v42 = vsub.s32 %v3422_v35, %v4303_v63  ;;  %v3418_v44 = vsub.s32 %v3415_v56, %v4303_v63 }
 0x28f   : > { %v3276_v46 = vpop.permute.xlu1 %3275  ;;  %v3443_v55 = vadd.s32 4294967208, %v4933_v37  ;;  %v3457_v17 = vadd.s32 4294967192, %v4933_v37  ;;  %v3439_v32 = vsub.s32 %v3436_v51, %v4303_v63 }
 0x290   : > { %v3377_v19 = vrot.slane %v3276_v46, %v3376_v57 }
 0x291   : > { %v3446_v18 = vsub.s32 %v3443_v55, %v4303_v63  ;;  %v3460_v23 = vsub.s32 %v3457_v17, %v4303_v63 }
 0x292   : > { %v3379_v2 = vsel %vm3378_vm0, %v3377_v19, %v3372_v41 }
 0x293   : > { %v3386_v30 = vsel %vm3385_vm1, %v3384_v26, %v3379_v2 }
 0x294   : > { %v4928_v53 = vpop.permute.xlu0 %3341  ;;  %v3393_v40 = vsel %vm3392_vm2, %v3391_v5, %v3386_v30 }
 0x29a   : > { %v4922_v45 = vpop.permute.xlu1 %3290 }
 0x29b   : > { %v3412_v49 = vrot.slane %v4922_v45, %v3411_v7  ;;  %v3515_v45 = vrot.slane %v4928_v53, %v3418_v44 }
 0x29f   : > { %v4924_v47 = vpop.permute.xlu1 %3338 }
 0x2a4   : > { %v3336_v24 = vpop.permute.xlu0 %3335 }
 0x2a5   : > { %v3505_v11 = vrot.slane %v3336_v24, %v3404_v1  ;;  %v3450_v24 = vadd.s32 4294967200, %v4933_v37 }
 0x2a7   : > { %v3453_v53 = vsub.s32 %v3450_v24, %v4303_v63 }
 0x2a9   : > { %v3285_v48 = vpop.permute.xlu1 %3284 }
 0x2aa   : > { %v3398_v34 = vrot.slane %v3285_v48, %v3397_v25 }
 0x2ac   : > { %v3400_v36 = vsel %vm3399_vm3, %v3398_v34, %v3393_v40 }
 0x2af   : > { %v3333_v50 = vpop.permute.xlu1 %3332 }
 0x2b0   : > { %v3500_v3 = vrot.slane %v3333_v50, %v3397_v25  ;;  %v3510_v50 = vrot.slane %v4924_v47, %v3411_v7  ;;  %v3471_v25 = vadd.s32 4294967176, %v4933_v37 }
 0x2b2   : > { %v3501_v15 = vsel %vm3399_vm3, %v3500_v3, %v3496_v38  ;;  %v3474_v56 = vsub.s32 %v3471_v25, %v4303_v63 }
 0x2b3   : > { %v3506_v46 = vsel %vm3406_vm4, %v3505_v11, %v3501_v15 }
 0x2b4   : > { %v4935_v59 = vpop.permute.xlu0 %3350  ;;  %v3511_v16 = vsel %vm3413_vm5, %v3510_v50, %v3506_v46 }
 0x2b5   : > { %v3530_v28 = vrot.slane %v4935_v59, %v3439_v32 }
 0x2b9   : > { %v4926_v33 = vpop.permute.xlu1 %3293 }
 0x2ba   : > { %v3419_v47 = vrot.slane %v4926_v33, %v3418_v44 }
 0x2be   : > { %v4941_v12 = vpop.permute.xlu0 %3353 }
 0x2c4   : > { %v3288_v52 = vpop.permute.xlu1 %3287 }
 0x2c5   : > { %v3405_v6 = vrot.slane %v3288_v52, %v3404_v1  ;;  %v3432_v52 = vsub.s32 %v3429_v31, %v4303_v63 }
 0x2c7   : > { %v3407_v48 = vsel %vm3406_vm4, %v3405_v6, %v3400_v36 }
 0x2c8   : > { %v3414_v57 = vsel %vm3413_vm5, %v3412_v49, %v3407_v48 }
 0x2c9   : > { %v4951_v20 = vpop.permute.xlu0 %3299  ;;  %v3421_v19 = vsel %vm3420_vm6, %v3419_v47, %v3414_v57 }
 0x2ca   : > { %v3433_v33 = vrot.slane %v4951_v20, %v3432_v52 }
 0x2ce   : > { %v4930_v54 = vpop.permute.xlu1 %3302 }
 0x2cf   : > { %v3440_v3 = vrot.slane %v4930_v54, %v3439_v32 }
 0x2d3   : > { %v3348_v4 = vpop.permute.xlu0 %3347 }
 0x2d4   : > { %v3525_v22 = vrot.slane %v3348_v4, %v3432_v52 }
 0x2d9   : > { %v4938_v62 = vpop.permute.xlu1 %3296 }
 0x2da   : > { %v3426_v13 = vrot.slane %v4938_v62, %v3425_v42  ;;  %v3516_v62 = vsel %vm3420_vm6, %v3515_v45, %v3511_v16 }
 0x2dc   : > { %v3428_v41 = vsel %vm3427_vm7, %v3426_v13, %v3421_v19 }
 0x2dd   : > { %v3435_v26 = vsel %vm3434_vm8, %v3433_v33, %v3428_v41 }
 0x2de   : > { %v4944_v14 = vpop.permute.xlu1 %3344  ;;  %v3442_v34 = vsel %vm3441_vm9, %v3440_v3, %v3435_v26 }
 0x2df   : > { %v3520_v8 = vrot.slane %v4944_v14, %v3425_v42  ;;  %v3464_v14 = vadd.s32 4294967184, %v4933_v37 }
 0x2e1   : > { %v3521_v21 = vsel %vm3427_vm7, %v3520_v8, %v3516_v62  ;;  %v3467_v20 = vsub.s32 %v3464_v14, %v4303_v63 }
 0x2e2   : > { %v3526_v2 = vsel %vm3434_vm8, %v3525_v22, %v3521_v21 }
 0x2e3   : > { %v4955_v0 = vpop.permute.xlu1 %3305  ;;  %v3531_v37 = vsel %vm3441_vm9, %v3530_v28, %v3526_v2 }
 0x2e4   : > { %v3447_v27 = vrot.slane %v4955_v0, %v3446_v18  ;;  %v3535_v0 = vrot.slane %v4941_v12, %v3446_v18 }
 0x2e6   : > { %v3449_v59 = vsel %vm3448_vm10, %v3447_v27, %v3442_v34  ;;  %v3536_v38 = vsel %vm3448_vm10, %v3535_v0, %v3531_v37 }
 0x2e8   : > { %v4972_v43 = vpop.permute.xlu0 %3362 }
 0x2e9   : > { %v3550_v12 = vrot.slane %v4972_v43, %v3467_v20 }
 0x2ee   : > { %v4966_v39 = vpop.permute.xlu1 %3314 }
 0x2ef   : > { %v3468_v63 = vrot.slane %v4966_v39, %v3467_v20 }
 0x2f3   : > { %v3357_v9 = vpop.permute.xlu0 %3356 }
 0x2f4   : > { %v3540_v4 = vrot.slane %v3357_v9, %v3453_v53 }
 0x2f6   : > { %v3541_v15 = vsel %vm3455_vm11, %v3540_v4, %v3536_v38 }
 0x2f8   : > { %v3309_v61 = vpop.permute.xlu1 %3308 }
 0x2f9   : > { %v3454_v29 = vrot.slane %v3309_v61, %v3453_v53 }
 0x2fb   : > { %v3456_v5 = vsel %vm3455_vm11, %v3454_v29, %v3449_v59 }
 0x2fd   : > { %v3312_v58 = vpop.permute.xlu1 %3311 }
 0x2fe   : > { %v3461_v30 = vrot.slane %v3312_v58, %v3460_v23 }
 0x300   : > { %v3463_v6 = vsel %vm3462_vm12, %v3461_v30, %v3456_v5 }
 0x301   : > { %v3470_v31 = vsel %vm3469_vm13, %v3468_v63, %v3463_v6 }
 0x303   : > { %v3360_v1 = vpop.permute.xlu0 %3359 }
 0x304   : > { %v3545_v35 = vrot.slane %v3360_v1, %v3460_v23 }
 0x306   : > { %v3546_v11 = vsel %vm3462_vm12, %v3545_v35, %v3541_v15 }
 0x307   : > { %v3551_v44 = vsel %vm3469_vm13, %v3550_v12, %v3546_v11 }
 0x308   : > { %v3318_v54 = vpop.permute.xlu1 %3317 }
 0x309   : > { %v3475_v7 = vrot.slane %v3318_v54, %v3474_v56 }
 0x30b   : > { %v3477_v42 = vsel %vm3476_vm14, %v3475_v7, %v3470_v31 }
 0x30d   : > { %v3366_v40 = vpop.permute.xlu0 %3365 }
 0x30e   : > { %v3555_v36 = vrot.slane %v3366_v40, %v3474_v56 }
 0x310   : > { %v3556_v46 = vsel %vm3476_vm14, %v3555_v36, %v3551_v44 }
 0x311   : > { %v3557_v48 = vcombine.low %v3477_v42, %v3556_v46 }
 0x313   : > { %v3564_v39 = vrot.slane %v3557_v48, %v4330_v10 }
 0x315   : > { %v3571_v49 = vrot.slane %v3564_v39, %v4330_v10 }
 0x317   : > { %3577 = vst.msk [vmem:[%s203_s26] sm:$0x3] %vm3575_vm15, %v3571_v49 }
 0x318   : > { %3932 = shalt.err (!%p3929_p7)
}
 0x319   : > { %s3933_s22 = scalar_lea.hbm %s5015_s27, 32  ;;  %s3937_s8 = scalar_lea.hbm %s5062_s3, 64 }
 0x31a   : > { %p3934_p9 = scmp.ne.s32.totalorder %s5015_s27, %s3933_s22  ;;  %p3938_p5 = scmp.lt.u32.totalorder %s5015_s27, %s5062_s3 }
 0x31b   : > { %p3939_p11 = scmp.lt.u32.totalorder %s3937_s8, %s3933_s22  ;;  %p3941_p4 = scmp.lt.u32.totalorder %s3933_s22, %s5015_s27 }
 0x31c   : > { %p3935_p2 = pnand %p3934_p9, %p4111_p12 }
 0x31d   : > { %p3940_p1 = por %p3939_p11, %p3938_p5 }
 0x31e   : > { %p3936_p0 = pneg %p3935_p2 }
 0x31f   : > { %p3942_p6 = por %p3941_p4, %p3940_p1 }
 0x321   : > { %p3943_p8 = pnand %p3942_p6, %p3936_p0 }
 0x323   : > { %3946 = shalt.err (!%p3943_p8)
}
 0x324   : > { %3794 = dma.vmem_to_hbm [thread:$0]  (%p4111_p12), %s5017_s5, 32, %s5015_s27, %s3579_s16  }
 0x325 PF: > { %s3605_s20 = sand.u32 1, %s3977_s12   ;;  %p5077_p10 = scmp.ne.s32.totalorder %s5067_s19, 0 }
 0x326   : > { %p5078_p13 = scmp.ge.s32.totalorder %s3989_s15, 2  ;;  %s3606_s4 = scalar_lea.sflag [#allocation4], %s3605_s20 }
 0x328   : > { %p3805_p3 = pnand %p5078_p13, %p5077_p10 }
 0x32a   : > { %3972 = dma.done.wait (!%p3805_p3), %s3606_s4, 32  }
 0x32b   : > { %3974 = vsyncadd (!%p3805_p3), %s3606_s4, 4294967264  ;;  %p17_p7 = scmp.ge.s32.totalorder %s4076_s24, 4   ;;  %s5079_s12 = smov %s3981_s13 }
 0x32c   : > { %s5080_s13 = smov %s3985_s14  ;;  %s5081_s14 = smov %s4107_s17 }
 0x32d   : > { %s5082_s15 = smov %s4076_s24  ;;  %19 = sbr.rel (!%p17_p7) target bundleno = 6 (0x6), region = 81 }
 0x334   :  { %3611 = vsyncpa [#allocation3], 1 }
 0x335   :  { %3613 = vsyncpa [#allocation3 + $0x1], 1 }
 0x336   :  { %3614 = vsyncpa [#allocation6], 1 }
 0x337   :  { %3615 = vsyncpa [#allocation4], 1 }
 0x338   :  { %3617 = vsyncpa [#allocation4 + $0x1], 1 }

</bundles_post_ra>
